<compile_context>
chip_gen: v6e
topology: v6e:2x2x1
jax: 0.10.0
libtpu: 0.0.40
codegen_flags: <defaults>
</compile_context>

<pallas_src>
import jax
import jax.numpy as jnp
from jax.experimental import pallas as pl
from jax.experimental.pallas import tpu as pltpu


def _round_up(n, m):
    return ((n + m - 1) // m) * m


def _vmem_budget_bytes():
    """~3/4 of physical VMEM (96 MiB v5e/v6e, 48 MiB v7x); safe fallback."""
    try:
        cap = getattr(pltpu.get_tpu_info(), "vmem_capacity_bytes", None)
        if cap:
            return int(cap) * 3 // 4
    except Exception:
        pass
    return 48 * 1024 * 1024


def prepare_params(params, *, param_dtype=jnp.bfloat16):
    """One-time parameter prep (hoisted out of the forward pass).

    * biases reshaped to 2-D (1, out) once,
    * weights cast to `param_dtype` (bf16 by default: native MXU dtype, half
      the HBM bytes).  The matmul still accumulates in f32 inside the kernel.
    PyTorch weights are [out, in]; pass W_pt.T here so W is [in, out].
    """
    prepared = []
    for w, b in params:
        w = jnp.asarray(w).astype(param_dtype)
        b = jnp.asarray(b, jnp.float32).reshape(1, -1)
        prepared.append((w, b))
    return prepared


def _make_mlp_kernel(num_layers):
    """Fused MLP kernel. Ref order: x, (W1, b1), ..., (W_L, b_L), out."""

    def kernel(*refs):
        x_ref = refs[0]
        out_ref = refs[-1]
        param_refs = refs[1:-1]
        h = x_ref[...]
        for li in range(num_layers):
            w = param_refs[2 * li][...]
            b = param_refs[2 * li + 1][...]
            # MXU matmul (bf16 or f32 operands) with f32 accumulation; the
            # bias add + ReLU run on the VPU as epilogue filler.
            y = jnp.dot(h.astype(w.dtype), w, preferred_element_type=jnp.float32) + b
            h = jnp.maximum(y, 0.0) if li < num_layers - 1 else y
        out_ref[...] = h.astype(out_ref.dtype)

    return kernel


def _choose_batch_tile(batch, dims, block_batch, vmem_budget):
    batch8 = _round_up(batch, 8)
    tb = min(_round_up(block_batch, 8), batch8)
    # Guarantee >= 2 grid steps whenever the batch allows it -> the "parallel"
    # batch axis can be sharded across both TensorCores on v7x.
    if batch8 // tb < 2 and batch8 >= 16:
        tb = _round_up(pl.cdiv(batch8, 2), 8)
    # Crude VMEM clamp: double-buffered x/out tiles + widest live activations.
    per_row_bytes = 4 * (2 * dims[0] + 2 * dims[-1] + 2 * max(dims))
    max_rows = max(8, (vmem_budget // 2) // max(per_row_bytes, 1))
    tb = max(8, min(tb, (max_rows // 8) * 8))
    return tb


def fnn_forward(x, prepared_params, *, block_batch=1024):
    """Run the fused MLP Pallas kernel.

    Args:
      x: [batch, input_size] float32.
      prepared_params: output of prepare_params() -- list of (W [in,out], b [1,out]).
      block_batch: requested rows per batch tile.
    Returns:
      [batch, output_size] float32.
    """
    batch, in_dim = x.shape
    num_layers = len(prepared_params)
    dims = [in_dim] + [int(w.shape[1]) for w, _ in prepared_params]
    out_dim = dims[-1]

    vmem_budget = _vmem_budget_bytes()
    tb = _choose_batch_tile(batch, dims, block_batch, vmem_budget)
    batch_pad = _round_up(batch, tb)

    # Only the batch axis is ever padded (one extra pass over x, and only when
    # batch % tb != 0).  Feature axes stay unpadded: full-extent block dims
    # satisfy the (8,128) rule, so no padded-lane HBM traffic anywhere.
    if batch_pad != batch:
        x_in = jnp.zeros((batch_pad, in_dim), x.dtype).at[:batch].set(x)
    else:
        x_in = x

    flat_inputs = [x_in]
    for w, b in prepared_params:
        flat_inputs += [w, b]

    grid = (batch_pad // tb,)

    def build(use_single_buffer_params):
        param_kwargs = {}
        if use_single_buffer_params:
            # Constant index_map -> block never changes; a single buffer halves
            # the resident-parameter VMEM footprint (matters most on v7x).
            param_kwargs = dict(pipeline_mode=pl.Buffered(1))
        in_specs = [pl.BlockSpec((tb, in_dim), lambda i: (i, 0))]
        for li in range(num_layers):
            din, dout = dims[li], dims[li + 1]
            in_specs.append(pl.BlockSpec((din, dout), lambda i: (0, 0), **param_kwargs))
            in_specs.append(pl.BlockSpec((1, dout), lambda i: (0, 0), **param_kwargs))
        out_spec = pl.BlockSpec((tb, out_dim), lambda i: (i, 0))

        flops = 2 * batch_pad * sum(dims[i] * dims[i + 1] for i in range(num_layers))
        bytes_accessed = (
            int(x_in.size) * x_in.dtype.itemsize
            + sum(int(a.size) * a.dtype.itemsize for a in flat_inputs[1:])
            + batch_pad * out_dim * 4
        )
        return pl.pallas_call(
            _make_mlp_kernel(num_layers),
            out_shape=jax.ShapeDtypeStruct((batch_pad, out_dim), jnp.float32),
            grid=grid,
            in_specs=in_specs,
            out_specs=out_spec,
            compiler_params=pltpu.CompilerParams(
                dimension_semantics=("parallel",),      # shard batch tiles across TCs
                vmem_limit_bytes=int(vmem_budget),
            ),
            cost_estimate=pl.CostEstimate(
                flops=int(flops), transcendentals=0, bytes_accessed=int(bytes_accessed)
            ),
        )

    # TODO(synk): add a K/N-tiled streaming-weight path (extra "arbitrary" grid
    # axis + f32 VMEM accumulator) for MLPs whose parameters exceed the VMEM
    # budget (most relevant on v7x's 64 MiB); the path below keeps all weights
    # resident, which is optimal for small/medium MLPs.
    try:
        out_padded = build(True)(*flat_inputs)
    except Exception:
        # Fallback if this JAX build rejects single-buffered BlockSpecs.
        out_padded = build(False)(*flat_inputs)

    return out_padded[:batch] if batch_pad != batch else out_padded


def init_params(key, input_size, hidden_layers, output_size):
    """Deterministic parameter init (PyTorch nn.Linear-style uniform bounds)."""
    dims = [input_size] + list(hidden_layers) + [output_size]
    params = []
    for i in range(len(dims) - 1):
        fan_in, fan_out = dims[i], dims[i + 1]
        key, kw, kb = jax.random.split(key, 3)
        bound = 1.0 / jnp.sqrt(fan_in)
        w = jax.random.uniform(kw, (fan_in, fan_out), jnp.float32, -bound, bound)
        b = jax.random.uniform(kb, (1, fan_out), jnp.float32, -bound, bound)
        params.append((w, b))
    return params


def fnn_forward_ref(x, prepared_params):
    """Pure-JAX reference mirroring the kernel's per-layer dtypes."""
    h = x
    for i, (w, b) in enumerate(prepared_params):
        h = jnp.dot(h.astype(w.dtype), w, preferred_element_type=jnp.float32) + b
        if i < len(prepared_params) - 1:
            h = jax.nn.relu(h)
    return h


if __name__ == "__main__":
    key = jax.random.PRNGKey(0)

    # ---- Test 1: bf16 params (default fast path); batch splits into 2 tiles --
    batch, input_size, output_size = 512, 16, 8
    hidden_layers = [64, 64]
    key, kx = jax.random.split(key)
    x = jax.random.normal(kx, (batch, input_size), jnp.float32)
    raw_params = init_params(key, input_size, hidden_layers, output_size)

    params_bf16 = prepare_params(raw_params, param_dtype=jnp.bfloat16)  # hoisted, once
    out = jax.block_until_ready(fnn_forward(x, params_bf16, block_batch=1024))
    assert out.shape == (batch, output_size)

    ref_bf16 = fnn_forward_ref(x, params_bf16)                     # same dtypes as kernel
    assert jnp.allclose(out, ref_bf16, atol=3e-3, rtol=3e-3), "mismatch vs bf16 reference"
    params_f32_sanity = prepare_params(raw_params, param_dtype=jnp.float32)
    ref_f32 = fnn_forward_ref(x, params_f32_sanity)                # semantic sanity vs f32 MLP
    assert jnp.allclose(out, ref_f32, atol=5e-2, rtol=5e-2), "mismatch vs f32 reference"

    # ---- Test 2: f32 params, ragged batch (exercises batch pad + slice) ------
    batch2, in2, out2 = 100, 16, 8
    key, kx2 = jax.random.split(key)
    x2 = jax.random.normal(kx2, (batch2, in2), jnp.float32)
    raw2 = init_params(key, in2, [32], out2)
    params2 = prepare_params(raw2, param_dtype=jnp.float32)
    o2 = jax.block_until_ready(fnn_forward(x2, params2, block_batch=1024))
    assert o2.shape == (batch2, out2)
    r2 = fnn_forward_ref(x2, params2)
    assert jnp.allclose(o2, r2, atol=5e-3, rtol=5e-3), "mismatch vs f32 reference (ragged)"

    print("KERNEL_OK")
</pallas_src>

<mosaic_0001>
module attributes {stable_mosaic.version = 11 : i64} {
  func.func @kernel(%arg0: i32, %arg1: memref<256x16xf32, #tpu.memory_space<vmem>>, %arg2: memref<16x64xbf16, #tpu.memory_space<vmem>>, %arg3: memref<1x64xf32, #tpu.memory_space<vmem>>, %arg4: memref<64x64xbf16, #tpu.memory_space<vmem>>, %arg5: memref<1x64xf32, #tpu.memory_space<vmem>>, %arg6: memref<64x8xbf16, #tpu.memory_space<vmem>>, %arg7: memref<1x8xf32, #tpu.memory_space<vmem>>, %arg8: memref<256x8xf32, #tpu.memory_space<vmem>>) attributes {dimension_semantics = [#tpu.dimension_semantics<parallel>], iteration_bounds = array<i64: 2>, scalar_prefetch = 0 : i64, scratch_operands = 0 : i64, tpu.core_type = #tpu.core_type<tc>, window_params = [{transform_indices = @transform_0, window_bounds = array<i64: 256, 16>}, {pipeline_mode = #tpu.pipeline_mode<synchronous>, transform_indices = @transform_1, window_bounds = array<i64: 16, 64>}, {pipeline_mode = #tpu.pipeline_mode<synchronous>, transform_indices = @transform_2, window_bounds = array<i64: 1, 64>}, {pipeline_mode = #tpu.pipeline_mode<synchronous>, transform_indices = @transform_3, window_bounds = array<i64: 64, 64>}, {pipeline_mode = #tpu.pipeline_mode<synchronous>, transform_indices = @transform_4, window_bounds = array<i64: 1, 64>}, {pipeline_mode = #tpu.pipeline_mode<synchronous>, transform_indices = @transform_5, window_bounds = array<i64: 64, 8>}, {pipeline_mode = #tpu.pipeline_mode<synchronous>, transform_indices = @transform_6, window_bounds = array<i64: 1, 8>}, {transform_indices = @transform_7, window_bounds = array<i64: 256, 8>}]} {
    %c0 = arith.constant 0 : index
    %c0_0 = arith.constant 0 : index
    %0 = vector.load %arg1[%c0, %c0_0] : memref<256x16xf32, #tpu.memory_space<vmem>>, vector<256x16xf32>
    %c0_1 = arith.constant 0 : index
    %c0_2 = arith.constant 0 : index
    %1 = vector.load %arg2[%c0_1, %c0_2] : memref<16x64xbf16, #tpu.memory_space<vmem>>, vector<16x64xbf16>
    %c0_3 = arith.constant 0 : index
    %c0_4 = arith.constant 0 : index
    %2 = vector.load %arg3[%c0_3, %c0_4] : memref<1x64xf32, #tpu.memory_space<vmem>>, vector<1x64xf32>
    %3 = arith.truncf %0 : vector<256x16xf32> to vector<256x16xbf16>
    %cst = arith.constant dense<0.000000e+00> : vector<256x64xf32>
    %4 = tpu.matmul %3, %1, %cst {dimension_numbers = #tpu.dot_dimension_numbers<[1], [0], [0], [1], [0, 0, 1, 1], [], []>} : vector<256x16xbf16>, vector<16x64xbf16>, vector<256x64xf32> -> vector<256x64xf32>
    %5 = vector.broadcast %2 : vector<1x64xf32> to vector<256x64xf32>
    %6 = arith.addf %4, %5 : vector<256x64xf32>
    %cst_5 = arith.constant 0.000000e+00 : f32
    %7 = vector.broadcast %cst_5 : f32 to vector<256x64xf32>
    %8 = arith.maximumf %6, %7 : vector<256x64xf32>
    %c0_6 = arith.constant 0 : index
    %c0_7 = arith.constant 0 : index
    %9 = vector.load %arg4[%c0_6, %c0_7] : memref<64x64xbf16, #tpu.memory_space<vmem>>, vector<64x64xbf16>
    %c0_8 = arith.constant 0 : index
    %c0_9 = arith.constant 0 : index
    %10 = vector.load %arg5[%c0_8, %c0_9] : memref<1x64xf32, #tpu.memory_space<vmem>>, vector<1x64xf32>
    %11 = arith.truncf %8 : vector<256x64xf32> to vector<256x64xbf16>
    %cst_10 = arith.constant dense<0.000000e+00> : vector<256x64xf32>
    %12 = tpu.matmul %11, %9, %cst_10 {dimension_numbers = #tpu.dot_dimension_numbers<[1], [0], [0], [1], [0, 0, 1, 1], [], []>} : vector<256x64xbf16>, vector<64x64xbf16>, vector<256x64xf32> -> vector<256x64xf32>
    %13 = vector.broadcast %10 : vector<1x64xf32> to vector<256x64xf32>
    %14 = arith.addf %12, %13 : vector<256x64xf32>
    %cst_11 = arith.constant 0.000000e+00 : f32
    %15 = vector.broadcast %cst_11 : f32 to vector<256x64xf32>
    %16 = arith.maximumf %14, %15 : vector<256x64xf32>
    %c0_12 = arith.constant 0 : index
    %c0_13 = arith.constant 0 : index
    %17 = vector.load %arg6[%c0_12, %c0_13] : memref<64x8xbf16, #tpu.memory_space<vmem>>, vector<64x8xbf16>
    %c0_14 = arith.constant 0 : index
    %c0_15 = arith.constant 0 : index
    %18 = vector.load %arg7[%c0_14, %c0_15] : memref<1x8xf32, #tpu.memory_space<vmem>>, vector<1x8xf32>
    %19 = arith.truncf %16 : vector<256x64xf32> to vector<256x64xbf16>
    %cst_16 = arith.constant dense<0.000000e+00> : vector<256x8xf32>
    %20 = tpu.matmul %19, %17, %cst_16 {dimension_numbers = #tpu.dot_dimension_numbers<[1], [0], [0], [1], [0, 0, 1, 1], [], []>} : vector<256x64xbf16>, vector<64x8xbf16>, vector<256x8xf32> -> vector<256x8xf32>
    %21 = vector.broadcast %18 : vector<1x8xf32> to vector<256x8xf32>
    %22 = arith.addf %20, %21 : vector<256x8xf32>
    %c0_17 = arith.constant 0 : index
    %c0_18 = arith.constant 0 : index
    %23 = vector.load %arg8[%c0_17, %c0_18] : memref<256x8xf32, #tpu.memory_space<vmem>>, vector<256x8xf32>
    tpu.vector_store %arg8[%c0_17, %c0_18], %22 {strides = array<i32>} : memref<256x8xf32, #tpu.memory_space<vmem>>, vector<256x8xf32>,
    return
  }
  func.func @transform_0(%arg0: i32) -> (i32, i32) {
    %c0_i32 = arith.constant 0 : i32
    %c0_i32_0 = arith.constant 0 : i32
    return %arg0, %c0_i32 : i32, i32
  }
  func.func @transform_1(%arg0: i32) -> (i32, i32) {
    %c0_i32 = arith.constant 0 : i32
    %c0_i32_0 = arith.constant 0 : i32
    %c0_i32_1 = arith.constant 0 : i32
    return %c0_i32, %c0_i32_0 : i32, i32
  }
  func.func @transform_2(%arg0: i32) -> (i32, i32) {
    %c0_i32 = arith.constant 0 : i32
    %c0_i32_0 = arith.constant 0 : i32
    %c0_i32_1 = arith.constant 0 : i32
    return %c0_i32, %c0_i32_0 : i32, i32
  }
  func.func @transform_3(%arg0: i32) -> (i32, i32) {
    %c0_i32 = arith.constant 0 : i32
    %c0_i32_0 = arith.constant 0 : i32
    %c0_i32_1 = arith.constant 0 : i32
    return %c0_i32, %c0_i32_0 : i32, i32
  }
  func.func @transform_4(%arg0: i32) -> (i32, i32) {
    %c0_i32 = arith.constant 0 : i32
    %c0_i32_0 = arith.constant 0 : i32
    %c0_i32_1 = arith.constant 0 : i32
    return %c0_i32, %c0_i32_0 : i32, i32
  }
  func.func @transform_5(%arg0: i32) -> (i32, i32) {
    %c0_i32 = arith.constant 0 : i32
    %c0_i32_0 = arith.constant 0 : i32
    %c0_i32_1 = arith.constant 0 : i32
    return %c0_i32, %c0_i32_0 : i32, i32
  }
  func.func @transform_6(%arg0: i32) -> (i32, i32) {
    %c0_i32 = arith.constant 0 : i32
    %c0_i32_0 = arith.constant 0 : i32
    %c0_i32_1 = arith.constant 0 : i32
    return %c0_i32, %c0_i32_0 : i32, i32
  }
  func.func @transform_7(%arg0: i32) -> (i32, i32) {
    %c0_i32 = arith.constant 0 : i32
    %c0_i32_0 = arith.constant 0 : i32
    return %arg0, %c0_i32 : i32, i32
  }
}

module attributes {stable_mosaic.version = 11 : i64} {
  func.func @kernel(%arg0: i32, %arg1: memref<256x16xf32, #tpu.memory_space<vmem>>, %arg2: memref<16x64xbf16, #tpu.memory_space<vmem>>, %arg3: memref<1x64xf32, #tpu.memory_space<vmem>>, %arg4: memref<64x64xbf16, #tpu.memory_space<vmem>>, %arg5: memref<1x64xf32, #tpu.memory_space<vmem>>, %arg6: memref<64x8xbf16, #tpu.memory_space<vmem>>, %arg7: memref<1x8xf32, #tpu.memory_space<vmem>>, %arg8: memref<256x8xf32, #tpu.memory_space<vmem>>) attributes {dimension_semantics = [#tpu.dimension_semantics<parallel>], iteration_bounds = array<i64: 2>, scalar_prefetch = 0 : i64, scratch_operands = 0 : i64, tpu.core_type = #tpu.core_type<tc>, window_params = [{transform_indices = @transform_0, window_bounds = array<i64: 256, 16>}, {pipeline_mode = #tpu.pipeline_mode<synchronous>, transform_indices = @transform_1, window_bounds = array<i64: 16, 64>}, {pipeline_mode = #tpu.pipeline_mode<synchronous>, transform_indices = @transform_2, window_bounds = array<i64: 1, 64>}, {pipeline_mode = #tpu.pipeline_mode<synchronous>, transform_indices = @transform_3, window_bounds = array<i64: 64, 64>}, {pipeline_mode = #tpu.pipeline_mode<synchronous>, transform_indices = @transform_4, window_bounds = array<i64: 1, 64>}, {pipeline_mode = #tpu.pipeline_mode<synchronous>, transform_indices = @transform_5, window_bounds = array<i64: 64, 8>}, {pipeline_mode = #tpu.pipeline_mode<synchronous>, transform_indices = @transform_6, window_bounds = array<i64: 1, 8>}, {transform_indices = @transform_7, window_bounds = array<i64: 256, 8>}]} {
    %c0 = arith.constant 0 : index
    %c0_0 = arith.constant 0 : index
    %0 = vector.load %arg1[%c0, %c0_0] : memref<256x16xf32, #tpu.memory_space<vmem>>, vector<256x16xf32>
    %c0_1 = arith.constant 0 : index
    %c0_2 = arith.constant 0 : index
    %1 = vector.load %arg2[%c0_1, %c0_2] : memref<16x64xbf16, #tpu.memory_space<vmem>>, vector<16x64xbf16>
    %c0_3 = arith.constant 0 : index
    %c0_4 = arith.constant 0 : index
    %2 = vector.load %arg3[%c0_3, %c0_4] : memref<1x64xf32, #tpu.memory_space<vmem>>, vector<1x64xf32>
    %3 = arith.truncf %0 : vector<256x16xf32> to vector<256x16xbf16>
    %cst = arith.constant dense<0.000000e+00> : vector<256x64xf32>
    %4 = tpu.matmul %3, %1, %cst {dimension_numbers = #tpu.dot_dimension_numbers<[1], [0], [0], [1], [0, 0, 1, 1], [], []>} : vector<256x16xbf16>, vector<16x64xbf16>, vector<256x64xf32> -> vector<256x64xf32>
    %5 = vector.broadcast %2 : vector<1x64xf32> to vector<256x64xf32>
    %6 = arith.addf %4, %5 : vector<256x64xf32>
    %cst_5 = arith.constant 0.000000e+00 : f32
    %7 = vector.broadcast %cst_5 : f32 to vector<256x64xf32>
    %8 = arith.maximumf %6, %7 : vector<256x64xf32>
    %c0_6 = arith.constant 0 : index
    %c0_7 = arith.constant 0 : index
    %9 = vector.load %arg4[%c0_6, %c0_7] : memref<64x64xbf16, #tpu.memory_space<vmem>>, vector<64x64xbf16>
    %c0_8 = arith.constant 0 : index
    %c0_9 = arith.constant 0 : index
    %10 = vector.load %arg5[%c0_8, %c0_9] : memref<1x64xf32, #tpu.memory_space<vmem>>, vector<1x64xf32>
    %11 = arith.truncf %8 : vector<256x64xf32> to vector<256x64xbf16>
    %cst_10 = arith.constant dense<0.000000e+00> : vector<256x64xf32>
    %12 = tpu.matmul %11, %9, %cst_10 {dimension_numbers = #tpu.dot_dimension_numbers<[1], [0], [0], [1], [0, 0, 1, 1], [], []>} : vector<256x64xbf16>, vector<64x64xbf16>, vector<256x64xf32> -> vector<256x64xf32>
    %13 = vector.broadcast %10 : vector<1x64xf32> to vector<256x64xf32>
    %14 = arith.addf %12, %13 : vector<256x64xf32>
    %cst_11 = arith.constant 0.000000e+00 : f32
    %15 = vector.broadcast %cst_11 : f32 to vector<256x64xf32>
    %16 = arith.maximumf %14, %15 : vector<256x64xf32>
    %c0_12 = arith.constant 0 : index
    %c0_13 = arith.constant 0 : index
    %17 = vector.load %arg6[%c0_12, %c0_13] : memref<64x8xbf16, #tpu.memory_space<vmem>>, vector<64x8xbf16>
    %c0_14 = arith.constant 0 : index
    %c0_15 = arith.constant 0 : index
    %18 = vector.load %arg7[%c0_14, %c0_15] : memref<1x8xf32, #tpu.memory_space<vmem>>, vector<1x8xf32>
    %19 = arith.truncf %16 : vector<256x64xf32> to vector<256x64xbf16>
    %cst_16 = arith.constant dense<0.000000e+00> : vector<256x8xf32>
    %20 = tpu.matmul %19, %17, %cst_16 {dimension_numbers = #tpu.dot_dimension_numbers<[1], [0], [0], [1], [0, 0, 1, 1], [], []>} : vector<256x64xbf16>, vector<64x8xbf16>, vector<256x8xf32> -> vector<256x8xf32>
    %21 = vector.broadcast %18 : vector<1x8xf32> to vector<256x8xf32>
    %22 = arith.addf %20, %21 : vector<256x8xf32>
    %c0_17 = arith.constant 0 : index
    %c0_18 = arith.constant 0 : index
    %23 = vector.load %arg8[%c0_17, %c0_18] : memref<256x8xf32, #tpu.memory_space<vmem>>, vector<256x8xf32>
    tpu.vector_store %arg8[%c0_17, %c0_18], %22 {strides = array<i32>} : memref<256x8xf32, #tpu.memory_space<vmem>>, vector<256x8xf32>,
    return
  }
  func.func @transform_0(%arg0: i32) -> (i32, i32) {
    %c0_i32 = arith.constant 0 : i32
    %c0_i32_0 = arith.constant 0 : i32
    return %arg0, %c0_i32 : i32, i32
  }
  func.func @transform_1(%arg0: i32) -> (i32, i32) {
    %c0_i32 = arith.constant 0 : i32
    %c0_i32_0 = arith.constant 0 : i32
    %c0_i32_1 = arith.constant 0 : i32
    return %c0_i32, %c0_i32_0 : i32, i32
  }
  func.func @transform_2(%arg0: i32) -> (i32, i32) {
    %c0_i32 = arith.constant 0 : i32
    %c0_i32_0 = arith.constant 0 : i32
    %c0_i32_1 = arith.constant 0 : i32
    return %c0_i32, %c0_i32_0 : i32, i32
  }
  func.func @transform_3(%arg0: i32) -> (i32, i32) {
    %c0_i32 = arith.constant 0 : i32
    %c0_i32_0 = arith.constant 0 : i32
    %c0_i32_1 = arith.constant 0 : i32
    return %c0_i32, %c0_i32_0 : i32, i32
  }
  func.func @transform_4(%arg0: i32) -> (i32, i32) {
    %c0_i32 = arith.constant 0 : i32
    %c0_i32_0 = arith.constant 0 : i32
    %c0_i32_1 = arith.constant 0 : i32
    return %c0_i32, %c0_i32_0 : i32, i32
  }
  func.func @transform_5(%arg0: i32) -> (i32, i32) {
    %c0_i32 = arith.constant 0 : i32
    %c0_i32_0 = arith.constant 0 : i32
    %c0_i32_1 = arith.constant 0 : i32
    return %c0_i32, %c0_i32_0 : i32, i32
  }
  func.func @transform_6(%arg0: i32) -> (i32, i32) {
    %c0_i32 = arith.constant 0 : i32
    %c0_i32_0 = arith.constant 0 : i32
    %c0_i32_1 = arith.constant 0 : i32
    return %c0_i32, %c0_i32_0 : i32, i32
  }
  func.func @transform_7(%arg0: i32) -> (i32, i32) {
    %c0_i32 = arith.constant 0 : i32
    %c0_i32_0 = arith.constant 0 : i32
    return %arg0, %c0_i32 : i32, i32
  }
}

</mosaic_0001>

<bundles_post_ra>
// kernel: tpu_custom_call.1
= control target key start
LH: loop header
LB: loop body
LE: loop exit
PB: predicated region body
PF: predicated region fallthrough
CT: control target
= control target key end

     0   :  { %s1547_s24 = smov 0   ;;  %s1872_s0 = inlined_call_operand.vmem [shape: f32[512,16], index: 0, kind: input, shape index: {}]   ;;  %s1873_s1 = inlined_call_operand.vmem [shape: bf16[16,64], index: 1, kind: input, shape index: {}]   ;;  %s1874_s2 = inlined_call_operand.vmem [shape: f32[1,64], index: 2, kind: input, shape index: {}]   ;;  %s1875_s3 = inlined_call_operand.vmem [shape: bf16[64,64], index: 3, kind: input, shape index: {}]   ;;  %s1876_s4 = inlined_call_operand.vmem [shape: f32[1,64], index: 4, kind: input, shape index: {}]   ;;  %s1877_s5 = inlined_call_operand.vmem [shape: bf16[64,8], index: 5, kind: input, shape index: {}]   ;;  %s1878_s6 = inlined_call_operand.vmem [shape: f32[1,8], index: 6, kind: input, shape index: {}]   ;;  %s1879_s7 = inlined_call_operand.vmem [shape: f32[512,8], index: 7, kind: output, shape index: {}]  }
   0x1 LB: > { %s1238_s25 = sadd.s32 4294967295, %s1505_s24   ;;  %p1242_p0 = scmp.ge.s32.totalorder %s1505_s24, 1  ;;  %s1505_s24 = sphi %s1547_s24, %s17_s24  }
   0x2   : > { %p238_p1 = scmp.lt.s32.totalorder %s1505_s24, 3 }
   0x4   : > { %p239_p2 = pnand %p1242_p0, %p238_p1 }
   0x5   : > { %s1243_s28 = sshll.u32 (!%p239_p2), %s1238_s25, 5 }
   0x6   : > { %242 = sbr.rel (%p239_p2) target bundleno = 688 (0x2b0), region = 48  ;;  %p271_p3 = scmp.lt.s32.totalorder (!%p239_p2), %s1243_s28, 63 }
   0xb   : > { %v1490_v0 = vld [vmem:[%s1873_s1] sm:$0xff]   ;;  %v1491_v1 = vld [vmem:[%s1875_s3 + $0x18] sm:$0xff]   ;;  %s1881_s28 = smov (!%p271_p3, %s1243_s28), 63  ;;  %vm346_vm0 = vcmask 130048   ;;  %v1492_v23 = vld [vmem:[%s1875_s3 + $0x10] sm:$0xff]   ;;  %vm643_vm1 = vcmask 523264  }
   0xc   : > { %1366 = vmatprep.subr.bf16.mxu0 %v1490_v0  ;;  %1480 = vmatprep.subr.bf16.mxu1 %v1490_v0  ;;  %s1244_s8 = sshll.u32 %s1881_s28, 3  ;;  %v1493_v28 = vld [vmem:[%s1875_s3 + $0x8] sm:$0xff]   ;;  %v1494_v52 = vld [vmem:[%s1875_s3] sm:$0xff]   ;;  %v1495_v53 = vld [vmem:[%s1877_s5 + $0x18] sm:$0xff]   ;;  %vm1149_vm2 = vcmask 64512  }
   0xd   : > { %1367 = vmatpush3.bf16.msra.mxu0 %v1490_v0  ;;  %1481 = vmatpush3.bf16.msra.mxu1 %v1490_v0  ;;  %s1569_s11 = scalar_lea.vmem %s1872_s0, %s1244_s8  ;;  %v1496_v54 = vld [vmem:[%s1877_s5 + $0x10] sm:$0xff]   ;;  %v1497_v55 = vld [vmem:[%s1877_s5 + $0x8] sm:$0xff]   ;;  %v1640_v58 = vld [vmem:[%s1874_s2] ss:$0 sm:$0xff]  ;;  %s1771_s14 = scalar_lea.vmem %s1879_s7, %s1244_s8 }
   0xe   : > { %1400 = vmatprep.subr.bf16.mxu1 %v1491_v1  ;;  %v283_v2 = vld [vmem:[%s1569_s11] sm:$0xff]  ;;  %v284_v3 = vld [vmem:[%s1569_s11 + $0x8] sm:$0xff]  ;;  %v285_v4 = vld [vmem:[%s1569_s11 + $0x10] sm:$0xff]  ;;  %1440 = vmatprep.subr.bf16.mxu0 %v1495_v53 }
   0xf   : > { %v318_v5 = vpack.c.bf16 %v284_v3, %v283_v2  ;;  %v286_v6 = vld [vmem:[%s1569_s11 + $0x18] sm:$0xff]  ;;  %v287_v7 = vld [vmem:[%s1569_s11 + $0x20] sm:$0xff]  ;;  %v288_v8 = vld [vmem:[%s1569_s11 + $0x28] sm:$0xff] }
  0x10   : > { %v319_v9 = vpack.c.bf16 %v286_v6, %v285_v4  ;;  %v320_v10 = vpack.c.bf16 %v288_v8, %v287_v7  ;;  %v289_v11 = vld [vmem:[%s1569_s11 + $0x30] sm:$0xff]  ;;  %v290_v12 = vld [vmem:[%s1569_s11 + $0x38] sm:$0xff]  ;;  %v291_v13 = vld [vmem:[%s1569_s11 + $0x40] sm:$0xff] }
  0x11   : > { %1368 = vmatprep.mubr.msk.bf16.mxu0 %vm346_vm0, %v318_v5  ;;  %v292_v14 = vld [vmem:[%s1569_s11 + $0x48] sm:$0xff]  ;;  %v299_v15 = vld [vmem:[%s1569_s11 + $0x80] sm:$0xff]  ;;  %v301_v18 = vld [vmem:[%s1569_s11 + $0x90] sm:$0xff]  ;;  %v321_v24 = vpack.c.bf16 %v290_v12, %v289_v11 }
  0x12   : > { %1369 = vmatmul.mubr.msk.bf16.vlgmr.msra.gmra.mxu0 %vm346_vm0, %v319_v9  ;;  %v300_v16 = vld [vmem:[%s1569_s11 + $0x88] sm:$0xff]  ;;  %v302_v19 = vld [vmem:[%s1569_s11 + $0x98] sm:$0xff]  ;;  %v303_v20 = vld [vmem:[%s1569_s11 + $0xa0] sm:$0xff]  ;;  %v322_v26 = vpack.c.bf16 %v292_v14, %v291_v13 }
  0x13   : > { %1372 = vmatprep.mubr.msk.bf16.mxu0 %vm346_vm0, %v320_v10  ;;  %v326_v17 = vpack.c.bf16 %v300_v16, %v299_v15  ;;  %v327_v21 = vpack.c.bf16 %v302_v19, %v301_v18  ;;  %v304_v22 = vld [vmem:[%s1569_s11 + $0xa8] sm:$0xff]  ;;  %v305_v27 = vld [vmem:[%s1569_s11 + $0xb0] sm:$0xff]  ;;  %v306_v29 = vld [vmem:[%s1569_s11 + $0xb8] sm:$0xff]  ;;  %1441 = vmatpush3.bf16.msra.mxu0 %v1495_v53 }
  0x14   : > { %v328_v25 = vpack.c.bf16 %v304_v22, %v303_v20  ;;  %v307_v30 = vld [vmem:[%s1569_s11 + $0xc0] sm:$0xff]  ;;  %v308_v31 = vld [vmem:[%s1569_s11 + $0xc8] sm:$0xff]  ;;  %v293_v32 = vld [vmem:[%s1569_s11 + $0x50] sm:$0xff]  ;;  %v329_v34 = vpack.c.bf16 %v306_v29, %v305_v27  ;;  %1442 = vmatprep.subr.bf16.mxu0 %v1496_v54 }
  0x15   : > { %1384 = vmatprep.mubr.msk.bf16.mxu1 %vm346_vm0, %v326_v17  ;;  %v294_v33 = vld [vmem:[%s1569_s11 + $0x58] sm:$0xff]  ;;  %v295_v35 = vld [vmem:[%s1569_s11 + $0x60] sm:$0xff]  ;;  %v296_v36 = vld [vmem:[%s1569_s11 + $0x68] sm:$0xff]  ;;  %v330_v37 = vpack.c.bf16 %v308_v31, %v307_v30 }
  0x16   : > { %1385 = vmatmul.mubr.msk.bf16.vlgmr.msra.gmra.mxu1 %vm346_vm0, %v327_v21  ;;  %v323_v38 = vpack.c.bf16 %v294_v33, %v293_v32  ;;  %v324_v39 = vpack.c.bf16 %v296_v36, %v295_v35  ;;  %v309_v40 = vld [vmem:[%s1569_s11 + $0xd0] sm:$0xff]  ;;  %v310_v41 = vld [vmem:[%s1569_s11 + $0xd8] sm:$0xff]  ;;  %v311_v42 = vld [vmem:[%s1569_s11 + $0xe0] sm:$0xff] }
  0x17   : > { %1388 = vmatprep.mubr.msk.bf16.mxu1 %vm346_vm0, %v328_v25  ;;  %1401 = vmatpush3.bf16.msra.mxu1 %v1491_v1  ;;  %v312_v43 = vld [vmem:[%s1569_s11 + $0xe8] sm:$0xff]  ;;  %v297_v44 = vld [vmem:[%s1569_s11 + $0x70] sm:$0xff]  ;;  %v298_v45 = vld [vmem:[%s1569_s11 + $0x78] sm:$0xff]  ;;  %v331_v46 = vpack.c.bf16 %v310_v41, %v309_v40 }
  0x18   : > { %1402 = vmatprep.subr.bf16.mxu1 %v1492_v23  ;;  %v332_v47 = vpack.c.bf16 %v312_v43, %v311_v42  ;;  %v325_v48 = vpack.c.bf16 %v298_v45, %v297_v44  ;;  %v313_v49 = vld [vmem:[%s1569_s11 + $0xf0] sm:$0xff]  ;;  %v314_v50 = vld [vmem:[%s1569_s11 + $0xf8] sm:$0xff]  ;;  %1443 = vmatpush3.bf16.msra.mxu0 %v1496_v54 }
  0x19   : > { %v333_v51 = vpack.c.bf16 %v314_v50, %v313_v49  ;;  %1444 = vmatprep.subr.bf16.mxu0 %v1497_v55 }
  0x1a   : > { %1373 = vmatmul.mubr.msk.bf16.gmra.mxu0 %vm346_vm0, %v321_v24 }
  0x1b   : > { %1376 = vmatprep.mubr.msk.bf16.mxu0 %vm346_vm0, %v322_v26  ;;  %1403 = vmatpush3.bf16.msra.mxu1 %v1492_v23 }
  0x1c   : > { %1404 = vmatprep.subr.bf16.mxu1 %v1493_v28  ;;  %1445 = vmatpush3.bf16.msra.mxu0 %v1497_v55 }
  0x1e   : > { %1389 = vmatmul.mubr.msk.bf16.gmra.mxu1 %vm346_vm0, %v329_v34 }
  0x1f   : > { %1392 = vmatprep.mubr.msk.bf16.mxu1 %vm346_vm0, %v330_v37  ;;  %1405 = vmatpush3.bf16.msra.mxu1 %v1493_v28 }
  0x20   : > { %1406 = vmatprep.subr.bf16.mxu1 %v1494_v52 }
  0x22   : > { %1377 = vmatmul.mubr.msk.bf16.gmra.mxu0 %vm346_vm0, %v323_v38 }
  0x23   : > { %1380 = vmatprep.mubr.msk.bf16.mxu0 %vm346_vm0, %v324_v39  ;;  %1407 = vmatpush3.bf16.msra.mxu1 %v1494_v52 }
  0x26   : > { %1393 = vmatmul.mubr.msk.bf16.gmra.mxu1 %vm346_vm0, %v331_v46 }
  0x27   : > { %1396 = vmatprep.mubr.msk.bf16.mxu1 %vm346_vm0, %v332_v47 }
  0x2a   : > { %1381 = vmatmul.mubr.msk.bf16.gmra.mxu0 %vm346_vm0, %v325_v48 }
  0x2e   : > { %1397 = vmatmul.mubr.msk.bf16.gmra.mxu1 %vm346_vm0, %v333_v51 }
  0xd2   : > { %v1370_v56 = vpop.f32.mrf.mxu0 }
  0xd3   : > { %v438_v63 = vadd.f32 %v1370_v56, %v1640_v58 }
  0xd4   : > { %v429_v57 = vpop.f32.mrf.mxu0 }
  0xd5   : > { %v430_v60 = vadd.f32 %v1640_v58, %v429_v57  ;;  %v558_v8 = vmax.f32 %v438_v63, 0.0 }
  0xd6   : > { %v1371_v59 = vpop.f32.mrf.mxu0  ;;  %v1644_v62 = vpop.f32.mrf.mxu1 }
  0xd7   : > { %v441_v61 = vadd.f32 %v1371_v59, %v1640_v58  ;;  %v556_v5 = vmax.f32 %v430_v60, 0.0 }
  0xd8   : > { %v432_v0 = vpop.f32.mrf.mxu0  ;;  %v493_v2 = vpop.f32.mrf.mxu1 }
  0xd9   : > { %v433_v1 = vadd.f32 %v1640_v58, %v432_v0  ;;  %v559_v3 = vmax.f32 %v441_v61, 0.0  ;;  %v494_v46 = vadd.f32 %v1640_v58, %v493_v2 }
  0xda   : > { %v1374_v4 = vpop.f32.mrf.mxu0  ;;  %v1648_v7 = vpop.f32.mrf.mxu1 }
  0xdb   : > { %v557_v6 = vmax.f32 %v433_v1, 0.0  ;;  %v598_v12 = vpack.c.bf16 %v559_v3, %v558_v8  ;;  %v454_v17 = vadd.f32 %v1374_v4, %v1640_v58  ;;  %v572_v55 = vmax.f32 %v494_v46, 0.0 }
  0xdc   : > { %v445_v9 = vpop.f32.mrf.mxu0  ;;  %v496_v11 = vpop.f32.mrf.mxu1  ;;  %v505_v8 = vadd.f32 %v1648_v7, %v1640_v58 }
  0xdd   : > { %v597_v10 = vpack.c.bf16 %v557_v6, %v556_v5  ;;  %v446_v14 = vadd.f32 %v1640_v58, %v445_v9  ;;  %v562_v26 = vmax.f32 %v454_v17, 0.0  ;;  %v497_v47 = vadd.f32 %v1640_v58, %v496_v11 }
  0xde   : > { %v1375_v13 = vpop.f32.mrf.mxu0  ;;  %v1653_v16 = vpop.f32.mrf.mxu1  ;;  %v502_v5 = vadd.f32 %v1644_v62, %v1640_v58 }
  0xdf   : > { %v457_v15 = vadd.f32 %v1375_v13, %v1640_v58  ;;  %1408 = vmatprep.mubr.msk.bf16.mxu1 %vm643_vm1, %v597_v10  ;;  %v560_v23 = vmax.f32 %v446_v14, 0.0  ;;  %v573_v57 = vmax.f32 %v497_v47, 0.0  ;;  %v575_v13 = vmax.f32 %v505_v8, 0.0 }
  0xe0   : > { %v448_v18 = vpop.f32.mrf.mxu0  ;;  %1409 = vmatmul.mubr.msk.bf16.vlgmr.msra.gmra.mxu1 %vm643_vm1, %v598_v12  ;;  %v509_v20 = vpop.f32.mrf.mxu1  ;;  %v574_v12 = vmax.f32 %v502_v5, 0.0  ;;  %v518_v7 = vadd.f32 %v1653_v16, %v1640_v58 }
  0xe1   : > { %v449_v19 = vadd.f32 %v1640_v58, %v448_v18  ;;  %v563_v21 = vmax.f32 %v457_v15, 0.0  ;;  %v605_v2 = vpack.c.bf16 %v573_v57, %v572_v55  ;;  %v510_v3 = vadd.f32 %v1640_v58, %v509_v20 }
  0xe2   : > { %v1378_v22 = vpop.f32.mrf.mxu0  ;;  %v1658_v25 = vpop.f32.mrf.mxu1  ;;  %v606_v18 = vpack.c.bf16 %v575_v13, %v574_v12 }
  0xe3   : > { %v561_v24 = vmax.f32 %v449_v19, 0.0  ;;  %v600_v30 = vpack.c.bf16 %v563_v21, %v562_v26  ;;  %v470_v35 = vadd.f32 %v1378_v22, %v1640_v58  ;;  %v576_v10 = vmax.f32 %v510_v3, 0.0 }
  0xe4   : > { %v461_v27 = vpop.f32.mrf.mxu0  ;;  %v512_v29 = vpop.f32.mrf.mxu1  ;;  %v521_v19 = vadd.f32 %v1658_v25, %v1640_v58 }
  0xe5   : > { %v599_v28 = vpack.c.bf16 %v561_v24, %v560_v23  ;;  %v462_v32 = vadd.f32 %v1640_v58, %v461_v27  ;;  %v566_v43 = vmax.f32 %v470_v35, 0.0  ;;  %v513_v4 = vadd.f32 %v1640_v58, %v512_v29 }
  0xe6   : > { %v1379_v31 = vpop.f32.mrf.mxu0  ;;  %v1663_v34 = vpop.f32.mrf.mxu1  ;;  %v578_v23 = vmax.f32 %v518_v7, 0.0  ;;  %v579_v24 = vmax.f32 %v521_v19, 0.0 }
  0xe7   : > { %v473_v33 = vadd.f32 %v1379_v31, %v1640_v58  ;;  %1412 = vmatprep.mubr.msk.bf16.mxu1 %vm643_vm1, %v599_v28  ;;  %v564_v41 = vmax.f32 %v462_v32, 0.0  ;;  %v577_v11 = vmax.f32 %v513_v4, 0.0  ;;  %v534_v16 = vadd.f32 %v1663_v34, %v1640_v58 }
  0xe8   : > { %v464_v36 = vpop.f32.mrf.mxu0  ;;  %1413 = vmatmul.mubr.msk.bf16.gmra.mxu1 %vm643_vm1, %v600_v30  ;;  %v525_v40 = vpop.f32.mrf.mxu1  ;;  %v608_v30 = vpack.c.bf16 %v579_v24, %v578_v23 }
  0xe9   : > { %v465_v37 = vadd.f32 %v1640_v58, %v464_v36  ;;  %v567_v38 = vmax.f32 %v473_v33, 0.0  ;;  %v607_v15 = vpack.c.bf16 %v577_v11, %v576_v10  ;;  %v526_v17 = vadd.f32 %v1640_v58, %v525_v40 }
  0xea   : > { %v1382_v39 = vpop.f32.mrf.mxu0  ;;  %v1395_v50 = vpop.f32.mrf.mxu1  ;;  %v582_v33 = vmax.f32 %v534_v16, 0.0 }
  0xeb   : > { %v565_v42 = vmax.f32 %v465_v37, 0.0  ;;  %v602_v48 = vpack.c.bf16 %v567_v38, %v566_v43  ;;  %v486_v53 = vadd.f32 %v1382_v39, %v1640_v58  ;;  %v580_v21 = vmax.f32 %v526_v17, 0.0 }
  0xec   : > { %v477_v44 = vpop.f32.mrf.mxu0  ;;  %v528_v60 = vpop.f32.mrf.mxu1  ;;  %v537_v25 = vadd.f32 %v1395_v50, %v1640_v58 }
  0xed   : > { %v601_v45 = vpack.c.bf16 %v565_v42, %v564_v41  ;;  %v478_v51 = vadd.f32 %v1640_v58, %v477_v44  ;;  %v570_v0 = vmax.f32 %v486_v53, 0.0  ;;  %v529_v62 = vadd.f32 %v1640_v58, %v528_v60  ;;  %v1498_v42 = vld [vmem:[%s1877_s5] sm:$0xff]  }
  0xee   : > { %v1383_v49 = vpop.f32.mrf.mxu0  ;;  %v1398_v9 = vpop.f32.mrf.mxu1  ;;  %v583_v35 = vmax.f32 %v537_v25, 0.0  ;;  %1446 = vmatprep.subr.bf16.mxu0 %v1498_v42 }
  0xef   : > { %v489_v52 = vadd.f32 %v1383_v49, %v1640_v58  ;;  %1416 = vmatprep.mubr.msk.bf16.mxu1 %vm643_vm1, %v601_v45  ;;  %v568_v61 = vmax.f32 %v478_v51, 0.0  ;;  %v581_v22 = vmax.f32 %v529_v62, 0.0  ;;  %v550_v38 = vadd.f32 %v1398_v9, %v1640_v58  ;;  %1447 = vmatpush3.bf16.msra.mxu0 %v1498_v42 }
  0xf0   : > { %v480_v54 = vpop.f32.mrf.mxu0  ;;  %1417 = vmatmul.mubr.msk.bf16.gmra.mxu1 %vm643_vm1, %v602_v48  ;;  %v541_v14 = vpop.f32.mrf.mxu1  ;;  %v610_v37 = vpack.c.bf16 %v583_v35, %v582_v33 }
  0xf1   : > { %v481_v56 = vadd.f32 %v1640_v58, %v480_v54  ;;  %v571_v59 = vmax.f32 %v489_v52, 0.0  ;;  %v609_v27 = vpack.c.bf16 %v581_v22, %v580_v21  ;;  %v542_v28 = vadd.f32 %v1640_v58, %v541_v14 }
  0xf2   : > { %v1399_v20 = vpop.f32.mrf.mxu1  ;;  %v586_v34 = vmax.f32 %v550_v38, 0.0 }
  0xf3   : > { %v569_v63 = vmax.f32 %v481_v56, 0.0  ;;  %v604_v6 = vpack.c.bf16 %v571_v59, %v570_v0  ;;  %v584_v31 = vmax.f32 %v542_v28, 0.0  ;;  %v553_v39 = vadd.f32 %v1399_v20, %v1640_v58 }
  0xf4   : > { %v544_v26 = vpop.f32.mrf.mxu1 }
  0xf5   : > { %v603_v1 = vpack.c.bf16 %v569_v63, %v568_v61  ;;  %v545_v29 = vadd.f32 %v1640_v58, %v544_v26  ;;  %v587_v40 = vmax.f32 %v553_v39, 0.0  ;;  %v1711_v58 = vld [vmem:[%s1876_s4] ss:$0 sm:$0xff] }
  0xf7   : > { %1420 = vmatprep.mubr.msk.bf16.mxu1 %vm643_vm1, %v603_v1  ;;  %v585_v32 = vmax.f32 %v545_v29, 0.0  ;;  %v612_v41 = vpack.c.bf16 %v587_v40, %v586_v34 }
  0xf8   : > { %1421 = vmatmul.mubr.msk.bf16.gmra.mxu1 %vm643_vm1, %v604_v6 }
  0xf9   : > { %1424 = vmatprep.mubr.msk.bf16.mxu1 %vm643_vm1, %v605_v2  ;;  %v611_v36 = vpack.c.bf16 %v585_v32, %v584_v31 }
 0x100   : > { %1425 = vmatmul.mubr.msk.bf16.gmra.mxu1 %vm643_vm1, %v606_v18 }
 0x101   : > { %1428 = vmatprep.mubr.msk.bf16.mxu1 %vm643_vm1, %v607_v15 }
 0x108   : > { %1429 = vmatmul.mubr.msk.bf16.gmra.mxu1 %vm643_vm1, %v608_v30 }
 0x109   : > { %1432 = vmatprep.mubr.msk.bf16.mxu1 %vm643_vm1, %v609_v27 }
 0x110   : > { %1433 = vmatmul.mubr.msk.bf16.gmra.mxu1 %vm643_vm1, %v610_v37 }
 0x111   : > { %1436 = vmatprep.mubr.msk.bf16.mxu1 %vm643_vm1, %v611_v36 }
 0x118   : > { %1437 = vmatmul.mubr.msk.bf16.gmra.mxu1 %vm643_vm1, %v612_v41 }
 0x1a0   : > { %v1410_v43 = vpop.f32.mrf.mxu1 }
 0x1a1   : > { %v735_v48 = vadd.f32 %v1410_v43, %v1711_v58 }
 0x1a2   : > { %v726_v44 = vpop.f32.mrf.mxu1 }
 0x1a3   : > { %v727_v46 = vadd.f32 %v1711_v58, %v726_v44  ;;  %v855_v55 = vmax.f32 %v735_v48, 0.0 }
 0x1a4   : > { %v1411_v45 = vpop.f32.mrf.mxu1 }
 0x1a5   : > { %v738_v47 = vadd.f32 %v1411_v45, %v1711_v58  ;;  %v853_v53 = vmax.f32 %v727_v46, 0.0 }
 0x1a6   : > { %v729_v49 = vpop.f32.mrf.mxu1 }
 0x1a7   : > { %v730_v50 = vadd.f32 %v1711_v58, %v729_v49  ;;  %v856_v51 = vmax.f32 %v738_v47, 0.0 }
 0x1a8   : > { %v1414_v52 = vpop.f32.mrf.mxu1 }
 0x1a9   : > { %v854_v54 = vmax.f32 %v730_v50, 0.0  ;;  %v895_v59 = vpack.c.bf16 %v856_v51, %v855_v55  ;;  %v751_v0 = vadd.f32 %v1414_v52, %v1711_v58 }
 0x1aa   : > { %v742_v56 = vpop.f32.mrf.mxu1 }
 0x1ab   : > { %v894_v57 = vpack.c.bf16 %v854_v54, %v853_v53  ;;  %v743_v61 = vadd.f32 %v1711_v58, %v742_v56  ;;  %v859_v8 = vmax.f32 %v751_v0, 0.0 }
 0x1ac   : > { %v1415_v60 = vpop.f32.mrf.mxu1 }
 0x1ad   : > { %v754_v63 = vadd.f32 %v1415_v60, %v1711_v58  ;;  %1448 = vmatprep.mubr.msk.bf16.mxu0 %vm643_vm1, %v894_v57  ;;  %v857_v5 = vmax.f32 %v743_v61, 0.0 }
 0x1ae   : > { %v745_v1 = vpop.f32.mrf.mxu1  ;;  %1449 = vmatmul.mubr.msk.bf16.vlgmr.msra.gmra.mxu0 %vm643_vm1, %v895_v59 }
 0x1af   : > { %v746_v2 = vadd.f32 %v1711_v58, %v745_v1  ;;  %v860_v3 = vmax.f32 %v754_v63, 0.0 }
 0x1b0   : > { %v1418_v4 = vpop.f32.mrf.mxu1 }
 0x1b1   : > { %v858_v6 = vmax.f32 %v746_v2, 0.0  ;;  %v897_v11 = vpack.c.bf16 %v860_v3, %v859_v8  ;;  %v767_v15 = vadd.f32 %v1418_v4, %v1711_v58 }
 0x1b2   : > { %v758_v9 = vpop.f32.mrf.mxu1 }
 0x1b3   : > { %v896_v10 = vpack.c.bf16 %v858_v6, %v857_v5  ;;  %v759_v13 = vadd.f32 %v1711_v58, %v758_v9  ;;  %v863_v21 = vmax.f32 %v767_v15, 0.0 }
 0x1b4   : > { %v1419_v12 = vpop.f32.mrf.mxu1 }
 0x1b5   : > { %v770_v14 = vadd.f32 %v1419_v12, %v1711_v58  ;;  %1452 = vmatprep.mubr.msk.bf16.mxu0 %vm643_vm1, %v896_v10  ;;  %v861_v19 = vmax.f32 %v759_v13, 0.0 }
 0x1b6   : > { %v761_v17 = vpop.f32.mrf.mxu1  ;;  %1453 = vmatmul.mubr.msk.bf16.gmra.mxu0 %vm643_vm1, %v897_v11 }
 0x1b7   : > { %v762_v62 = vadd.f32 %v1711_v58, %v761_v17  ;;  %v864_v18 = vmax.f32 %v770_v14, 0.0 }
 0x1b8   : > { %v1422_v7 = vpop.f32.mrf.mxu1 }
 0x1b9   : > { %v862_v20 = vmax.f32 %v762_v62, 0.0  ;;  %v899_v24 = vpack.c.bf16 %v864_v18, %v863_v21  ;;  %v783_v29 = vadd.f32 %v1422_v7, %v1711_v58 }
 0x1ba   : > { %v774_v22 = vpop.f32.mrf.mxu1 }
 0x1bb   : > { %v898_v23 = vpack.c.bf16 %v862_v20, %v861_v19  ;;  %v775_v27 = vadd.f32 %v1711_v58, %v774_v22  ;;  %v867_v35 = vmax.f32 %v783_v29, 0.0 }
 0x1bc   : > { %v1423_v26 = vpop.f32.mrf.mxu1 }
 0x1bd   : > { %v786_v28 = vadd.f32 %v1423_v26, %v1711_v58  ;;  %1456 = vmatprep.mubr.msk.bf16.mxu0 %vm643_vm1, %v898_v23  ;;  %v865_v32 = vmax.f32 %v775_v27, 0.0 }
 0x1be   : > { %v777_v30 = vpop.f32.mrf.mxu1  ;;  %1457 = vmatmul.mubr.msk.bf16.gmra.mxu0 %vm643_vm1, %v899_v24 }
 0x1bf   : > { %v778_v16 = vadd.f32 %v1711_v58, %v777_v30  ;;  %v868_v25 = vmax.f32 %v786_v28, 0.0 }
 0x1c0   : > { %v1426_v31 = vpop.f32.mrf.mxu1 }
 0x1c1   : > { %v866_v33 = vmax.f32 %v778_v16, 0.0  ;;  %v901_v38 = vpack.c.bf16 %v868_v25, %v867_v35  ;;  %v799_v41 = vadd.f32 %v1426_v31, %v1711_v58  ;;  %v1764_v16 = vld [vmem:[%s1878_s6] ss:$0 sm:$0xff] }
 0x1c2   : > { %v790_v36 = vpop.f32.mrf.mxu1 }
 0x1c3   : > { %v900_v37 = vpack.c.bf16 %v866_v33, %v865_v32  ;;  %v791_v34 = vadd.f32 %v1711_v58, %v790_v36  ;;  %v871_v48 = vmax.f32 %v799_v41, 0.0 }
 0x1c4   : > { %v1427_v39 = vpop.f32.mrf.mxu1 }
 0x1c5   : > { %v802_v40 = vadd.f32 %v1427_v39, %v1711_v58  ;;  %1460 = vmatprep.mubr.msk.bf16.mxu0 %vm643_vm1, %v900_v37  ;;  %v869_v46 = vmax.f32 %v791_v34, 0.0 }
 0x1c6   : > { %v793_v42 = vpop.f32.mrf.mxu1  ;;  %1461 = vmatmul.mubr.msk.bf16.gmra.mxu0 %vm643_vm1, %v901_v38 }
 0x1c7   : > { %v794_v43 = vadd.f32 %v1711_v58, %v793_v42  ;;  %v872_v44 = vmax.f32 %v802_v40, 0.0 }
 0x1c8   : > { %v1430_v45 = vpop.f32.mrf.mxu1 }
 0x1c9   : > { %v870_v47 = vmax.f32 %v794_v43, 0.0  ;;  %v903_v51 = vpack.c.bf16 %v872_v44, %v871_v48  ;;  %v815_v55 = vadd.f32 %v1430_v45, %v1711_v58 }
 0x1ca   : > { %v806_v49 = vpop.f32.mrf.mxu1 }
 0x1cb   : > { %v902_v50 = vpack.c.bf16 %v870_v47, %v869_v46  ;;  %v807_v53 = vadd.f32 %v1711_v58, %v806_v49  ;;  %v875_v0 = vmax.f32 %v815_v55, 0.0 }
 0x1cc   : > { %v1431_v52 = vpop.f32.mrf.mxu1 }
 0x1cd   : > { %v818_v54 = vadd.f32 %v1431_v52, %v1711_v58  ;;  %1464 = vmatprep.mubr.msk.bf16.mxu0 %vm643_vm1, %v902_v50  ;;  %v873_v61 = vmax.f32 %v807_v53, 0.0 }
 0x1ce   : > { %v809_v56 = vpop.f32.mrf.mxu1  ;;  %1465 = vmatmul.mubr.msk.bf16.gmra.mxu0 %vm643_vm1, %v903_v51 }
 0x1cf   : > { %v810_v57 = vadd.f32 %v1711_v58, %v809_v56  ;;  %v876_v59 = vmax.f32 %v818_v54, 0.0 }
 0x1d0   : > { %v1434_v60 = vpop.f32.mrf.mxu1 }
 0x1d1   : > { %v874_v63 = vmax.f32 %v810_v57, 0.0  ;;  %v905_v3 = vpack.c.bf16 %v876_v59, %v875_v0  ;;  %v831_v8 = vadd.f32 %v1434_v60, %v1711_v58 }
 0x1d2   : > { %v822_v1 = vpop.f32.mrf.mxu1 }
 0x1d3   : > { %v904_v2 = vpack.c.bf16 %v874_v63, %v873_v61  ;;  %v823_v5 = vadd.f32 %v1711_v58, %v822_v1  ;;  %v879_v15 = vmax.f32 %v831_v8, 0.0 }
 0x1d4   : > { %v1435_v4 = vpop.f32.mrf.mxu1 }
 0x1d5   : > { %v834_v6 = vadd.f32 %v1435_v4, %v1711_v58  ;;  %1468 = vmatprep.mubr.msk.bf16.mxu0 %vm643_vm1, %v904_v2  ;;  %v877_v13 = vmax.f32 %v823_v5, 0.0 }
 0x1d6   : > { %v825_v9 = vpop.f32.mrf.mxu1  ;;  %1469 = vmatmul.mubr.msk.bf16.gmra.mxu0 %vm643_vm1, %v905_v3 }
 0x1d7   : > { %v826_v10 = vadd.f32 %v1711_v58, %v825_v9  ;;  %v880_v11 = vmax.f32 %v834_v6, 0.0 }
 0x1d8   : > { %v1438_v12 = vpop.f32.mrf.mxu1 }
 0x1d9   : > { %v878_v14 = vmax.f32 %v826_v10, 0.0  ;;  %v907_v18 = vpack.c.bf16 %v880_v11, %v879_v15  ;;  %v847_v21 = vadd.f32 %v1438_v12, %v1711_v58 }
 0x1da   : > { %v838_v17 = vpop.f32.mrf.mxu1 }
 0x1db   : > { %v906_v62 = vpack.c.bf16 %v878_v14, %v877_v13  ;;  %v839_v19 = vadd.f32 %v1711_v58, %v838_v17  ;;  %v883_v28 = vmax.f32 %v847_v21, 0.0 }
 0x1dc   : > { %v1439_v7 = vpop.f32.mrf.mxu1 }
 0x1dd   : > { %v850_v20 = vadd.f32 %v1439_v7, %v1711_v58  ;;  %1472 = vmatprep.mubr.msk.bf16.mxu0 %vm643_vm1, %v906_v62  ;;  %v881_v26 = vmax.f32 %v839_v19, 0.0 }
 0x1de   : > { %v841_v22 = vpop.f32.mrf.mxu1  ;;  %1473 = vmatmul.mubr.msk.bf16.gmra.mxu0 %vm643_vm1, %v907_v18 }
 0x1df   : > { %v842_v23 = vadd.f32 %v1711_v58, %v841_v22  ;;  %v884_v24 = vmax.f32 %v850_v20, 0.0 }
 0x1e1   : > { %v882_v27 = vmax.f32 %v842_v23, 0.0  ;;  %v909_v30 = vpack.c.bf16 %v884_v24, %v883_v28 }
 0x1e3   : > { %v908_v29 = vpack.c.bf16 %v882_v27, %v881_v26 }
 0x1e5   : > { %1476 = vmatprep.mubr.msk.bf16.mxu0 %vm643_vm1, %v908_v29 }
 0x1e6   : > { %1477 = vmatmul.mubr.msk.bf16.gmra.mxu0 %vm643_vm1, %v909_v30 }
 0x26e   : > { %v1450_v58 = vpop.f32.mrf.mxu0 }
 0x26f   : > { %v1031_v25 = vadd.f32 %v1450_v58, %v1764_v16 }
 0x270   : > { %v1022_v31 = vpop.f32.mrf.mxu0 }
 0x271   : > { %1152 = vst.msk [vmem:[%s1771_s14 + $0x10] sm:$0xff] %vm1149_vm2, %v1031_v25  ;;  %v1023_v32 = vadd.f32 %v1764_v16, %v1022_v31 }
 0x272   : > { %v1451_v33 = vpop.f32.mrf.mxu0 }
 0x273   : > { %1150 = vst.msk [vmem:[%s1771_s14] sm:$0xff] %vm1149_vm2, %v1023_v32  ;;  %v1034_v35 = vadd.f32 %v1451_v33, %v1764_v16 }
 0x274   : > { %v1025_v36 = vpop.f32.mrf.mxu0 }
 0x275   : > { %1153 = vst.msk [vmem:[%s1771_s14 + $0x18] sm:$0xff] %vm1149_vm2, %v1034_v35  ;;  %v1026_v37 = vadd.f32 %v1764_v16, %v1025_v36 }
 0x276   : > { %v1454_v38 = vpop.f32.mrf.mxu0 }
 0x277   : > { %1151 = vst.msk [vmem:[%s1771_s14 + $0x8] sm:$0xff] %vm1149_vm2, %v1026_v37  ;;  %v1047_v39 = vadd.f32 %v1454_v38, %v1764_v16 }
 0x278   : > { %v1038_v34 = vpop.f32.mrf.mxu0 }
 0x279   : > { %1156 = vst.msk [vmem:[%s1771_s14 + $0x30] sm:$0xff] %vm1149_vm2, %v1047_v39  ;;  %v1039_v40 = vadd.f32 %v1764_v16, %v1038_v34 }
 0x27a   : > { %v1455_v41 = vpop.f32.mrf.mxu0 }
 0x27b   : > { %1154 = vst.msk [vmem:[%s1771_s14 + $0x20] sm:$0xff] %vm1149_vm2, %v1039_v40  ;;  %v1050_v42 = vadd.f32 %v1455_v41, %v1764_v16 }
 0x27c   : > { %v1041_v43 = vpop.f32.mrf.mxu0 }
 0x27d   : > { %1157 = vst.msk [vmem:[%s1771_s14 + $0x38] sm:$0xff] %vm1149_vm2, %v1050_v42  ;;  %v1042_v44 = vadd.f32 %v1764_v16, %v1041_v43 }
 0x27e   : > { %v1458_v45 = vpop.f32.mrf.mxu0 }
 0x27f   : > { %1155 = vst.msk [vmem:[%s1771_s14 + $0x28] sm:$0xff] %vm1149_vm2, %v1042_v44  ;;  %v1063_v46 = vadd.f32 %v1458_v45, %v1764_v16 }
 0x280   : > { %v1054_v47 = vpop.f32.mrf.mxu0 }
 0x281   : > { %1160 = vst.msk [vmem:[%s1771_s14 + $0x50] sm:$0xff] %vm1149_vm2, %v1063_v46  ;;  %v1055_v48 = vadd.f32 %v1764_v16, %v1054_v47 }
 0x282   : > { %v1459_v49 = vpop.f32.mrf.mxu0 }
 0x283   : > { %1158 = vst.msk [vmem:[%s1771_s14 + $0x40] sm:$0xff] %vm1149_vm2, %v1055_v48  ;;  %v1066_v50 = vadd.f32 %v1459_v49, %v1764_v16 }
 0x284   : > { %v1057_v51 = vpop.f32.mrf.mxu0 }
 0x285   : > { %1161 = vst.msk [vmem:[%s1771_s14 + $0x58] sm:$0xff] %vm1149_vm2, %v1066_v50  ;;  %v1058_v52 = vadd.f32 %v1764_v16, %v1057_v51 }
 0x286   : > { %v1462_v53 = vpop.f32.mrf.mxu0 }
 0x287   : > { %1159 = vst.msk [vmem:[%s1771_s14 + $0x48] sm:$0xff] %vm1149_vm2, %v1058_v52  ;;  %v1079_v54 = vadd.f32 %v1462_v53, %v1764_v16 }
 0x288   : > { %v1070_v55 = vpop.f32.mrf.mxu0 }
 0x289   : > { %1164 = vst.msk [vmem:[%s1771_s14 + $0x70] sm:$0xff] %vm1149_vm2, %v1079_v54  ;;  %v1071_v56 = vadd.f32 %v1764_v16, %v1070_v55 }
 0x28a   : > { %v1463_v57 = vpop.f32.mrf.mxu0 }
 0x28b   : > { %1162 = vst.msk [vmem:[%s1771_s14 + $0x60] sm:$0xff] %vm1149_vm2, %v1071_v56  ;;  %v1082_v59 = vadd.f32 %v1463_v57, %v1764_v16 }
 0x28c   : > { %v1073_v60 = vpop.f32.mrf.mxu0 }
 0x28d   : > { %1165 = vst.msk [vmem:[%s1771_s14 + $0x78] sm:$0xff] %vm1149_vm2, %v1082_v59  ;;  %v1074_v61 = vadd.f32 %v1764_v16, %v1073_v60 }
 0x28e   : > { %v1466_v63 = vpop.f32.mrf.mxu0 }
 0x28f   : > { %1163 = vst.msk [vmem:[%s1771_s14 + $0x68] sm:$0xff] %vm1149_vm2, %v1074_v61  ;;  %v1095_v0 = vadd.f32 %v1466_v63, %v1764_v16 }
 0x290   : > { %v1086_v1 = vpop.f32.mrf.mxu0 }
 0x291   : > { %1168 = vst.msk [vmem:[%s1771_s14 + $0x90] sm:$0xff] %vm1149_vm2, %v1095_v0  ;;  %v1087_v2 = vadd.f32 %v1764_v16, %v1086_v1 }
 0x292   : > { %v1467_v3 = vpop.f32.mrf.mxu0 }
 0x293   : > { %1166 = vst.msk [vmem:[%s1771_s14 + $0x80] sm:$0xff] %vm1149_vm2, %v1087_v2  ;;  %v1098_v4 = vadd.f32 %v1467_v3, %v1764_v16 }
 0x294   : > { %v1089_v5 = vpop.f32.mrf.mxu0 }
 0x295   : > { %1169 = vst.msk [vmem:[%s1771_s14 + $0x98] sm:$0xff] %vm1149_vm2, %v1098_v4  ;;  %v1090_v6 = vadd.f32 %v1764_v16, %v1089_v5 }
 0x296   : > { %v1470_v8 = vpop.f32.mrf.mxu0 }
 0x297   : > { %1167 = vst.msk [vmem:[%s1771_s14 + $0x88] sm:$0xff] %vm1149_vm2, %v1090_v6  ;;  %v1111_v9 = vadd.f32 %v1470_v8, %v1764_v16 }
 0x298   : > { %v1102_v10 = vpop.f32.mrf.mxu0 }
 0x299   : > { %1172 = vst.msk [vmem:[%s1771_s14 + $0xb0] sm:$0xff] %vm1149_vm2, %v1111_v9  ;;  %v1103_v11 = vadd.f32 %v1764_v16, %v1102_v10 }
 0x29a   : > { %v1471_v12 = vpop.f32.mrf.mxu0 }
 0x29b   : > { %1170 = vst.msk [vmem:[%s1771_s14 + $0xa0] sm:$0xff] %vm1149_vm2, %v1103_v11  ;;  %v1114_v13 = vadd.f32 %v1471_v12, %v1764_v16 }
 0x29c   : > { %v1105_v14 = vpop.f32.mrf.mxu0 }
 0x29d   : > { %1173 = vst.msk [vmem:[%s1771_s14 + $0xb8] sm:$0xff] %vm1149_vm2, %v1114_v13  ;;  %v1106_v15 = vadd.f32 %v1764_v16, %v1105_v14 }
 0x29e   : > { %v1474_v17 = vpop.f32.mrf.mxu0 }
 0x29f   : > { %1171 = vst.msk [vmem:[%s1771_s14 + $0xa8] sm:$0xff] %vm1149_vm2, %v1106_v15  ;;  %v1127_v62 = vadd.f32 %v1474_v17, %v1764_v16 }
 0x2a0   : > { %v1118_v18 = vpop.f32.mrf.mxu0 }
 0x2a1   : > { %1176 = vst.msk [vmem:[%s1771_s14 + $0xd0] sm:$0xff] %vm1149_vm2, %v1127_v62  ;;  %v1119_v7 = vadd.f32 %v1764_v16, %v1118_v18 }
 0x2a2   : > { %v1475_v19 = vpop.f32.mrf.mxu0 }
 0x2a3   : > { %1174 = vst.msk [vmem:[%s1771_s14 + $0xc0] sm:$0xff] %vm1149_vm2, %v1119_v7  ;;  %v1130_v20 = vadd.f32 %v1475_v19, %v1764_v16 }
 0x2a4   : > { %v1121_v21 = vpop.f32.mrf.mxu0 }
 0x2a5   : > { %1177 = vst.msk [vmem:[%s1771_s14 + $0xd8] sm:$0xff] %vm1149_vm2, %v1130_v20  ;;  %v1122_v22 = vadd.f32 %v1764_v16, %v1121_v21 }
 0x2a6   : > { %v1478_v23 = vpop.f32.mrf.mxu0 }
 0x2a7   : > { %1175 = vst.msk [vmem:[%s1771_s14 + $0xc8] sm:$0xff] %vm1149_vm2, %v1122_v22  ;;  %v1143_v24 = vadd.f32 %v1478_v23, %v1764_v16 }
 0x2a8   : > { %v1134_v26 = vpop.f32.mrf.mxu0 }
 0x2a9   : > { %1180 = vst.msk [vmem:[%s1771_s14 + $0xf0] sm:$0xff] %vm1149_vm2, %v1143_v24  ;;  %v1135_v27 = vadd.f32 %v1764_v16, %v1134_v26 }
 0x2aa   : > { %v1479_v28 = vpop.f32.mrf.mxu0 }
 0x2ab   : > { %1178 = vst.msk [vmem:[%s1771_s14 + $0xe0] sm:$0xff] %vm1149_vm2, %v1135_v27  ;;  %v1146_v29 = vadd.f32 %v1479_v28, %v1764_v16 }
 0x2ac   : > { %v1137_v30 = vpop.f32.mrf.mxu0 }
 0x2ad   : > { %1181 = vst.msk [vmem:[%s1771_s14 + $0xf8] sm:$0xff] %vm1149_vm2, %v1146_v29  ;;  %v1138_v58 = vadd.f32 %v1764_v16, %v1137_v30 }
 0x2af   : > { %1179 = vst.msk [vmem:[%s1771_s14 + $0xe8] sm:$0xff] %vm1149_vm2, %v1138_v58 }
 0x2b0 PF: > { %s17_s24 = sadd.s32 1, %s1505_s24  }
 0x2b1   : > { %p14_p4 = scmp.ge.s32.totalorder %s17_s24, 4  }
 0x2b3   :  { %16 = sbr.rel (!%p14_p4) target bundleno = 1 (0x1), region = 78 }

// kernel: tpu_custom_call.1
= control target key start
LH: loop header
LB: loop body
LE: loop exit
PB: predicated region body
PF: predicated region fallthrough
CT: control target
= control target key end

     0   :  { %s1547_s24 = smov 0   ;;  %s1872_s0 = inlined_call_operand.vmem [shape: f32[512,16], index: 0, kind: input, shape index: {}]   ;;  %s1873_s1 = inlined_call_operand.vmem [shape: bf16[16,64], index: 1, kind: input, shape index: {}]   ;;  %s1874_s2 = inlined_call_operand.vmem [shape: f32[1,64], index: 2, kind: input, shape index: {}]   ;;  %s1875_s3 = inlined_call_operand.vmem [shape: bf16[64,64], index: 3, kind: input, shape index: {}]   ;;  %s1876_s4 = inlined_call_operand.vmem [shape: f32[1,64], index: 4, kind: input, shape index: {}]   ;;  %s1877_s5 = inlined_call_operand.vmem [shape: bf16[64,8], index: 5, kind: input, shape index: {}]   ;;  %s1878_s6 = inlined_call_operand.vmem [shape: f32[1,8], index: 6, kind: input, shape index: {}]   ;;  %s1879_s7 = inlined_call_operand.vmem [shape: f32[512,8], index: 7, kind: output, shape index: {}]  }
   0x1 LB: > { %s1238_s25 = sadd.s32 4294967295, %s1505_s24   ;;  %p1242_p0 = scmp.ge.s32.totalorder %s1505_s24, 1  ;;  %s1505_s24 = sphi %s1547_s24, %s17_s24  }
   0x2   : > { %p238_p1 = scmp.lt.s32.totalorder %s1505_s24, 3 }
   0x4   : > { %p239_p2 = pnand %p1242_p0, %p238_p1 }
   0x5   : > { %s1243_s28 = sshll.u32 (!%p239_p2), %s1238_s25, 5 }
   0x6   : > { %242 = sbr.rel (%p239_p2) target bundleno = 688 (0x2b0), region = 48  ;;  %p271_p3 = scmp.lt.s32.totalorder (!%p239_p2), %s1243_s28, 63 }
   0xb   : > { %v1490_v0 = vld [vmem:[%s1873_s1] sm:$0xff]   ;;  %v1491_v1 = vld [vmem:[%s1875_s3 + $0x18] sm:$0xff]   ;;  %s1881_s28 = smov (!%p271_p3, %s1243_s28), 63  ;;  %vm346_vm0 = vcmask 130048   ;;  %v1492_v23 = vld [vmem:[%s1875_s3 + $0x10] sm:$0xff]   ;;  %vm643_vm1 = vcmask 523264  }
   0xc   : > { %1366 = vmatprep.subr.bf16.mxu0 %v1490_v0  ;;  %1480 = vmatprep.subr.bf16.mxu1 %v1490_v0  ;;  %s1244_s8 = sshll.u32 %s1881_s28, 3  ;;  %v1493_v28 = vld [vmem:[%s1875_s3 + $0x8] sm:$0xff]   ;;  %v1494_v52 = vld [vmem:[%s1875_s3] sm:$0xff]   ;;  %v1495_v53 = vld [vmem:[%s1877_s5 + $0x18] sm:$0xff]   ;;  %vm1149_vm2 = vcmask 64512  }
   0xd   : > { %1367 = vmatpush3.bf16.msra.mxu0 %v1490_v0  ;;  %1481 = vmatpush3.bf16.msra.mxu1 %v1490_v0  ;;  %s1569_s11 = scalar_lea.vmem %s1872_s0, %s1244_s8  ;;  %v1496_v54 = vld [vmem:[%s1877_s5 + $0x10] sm:$0xff]   ;;  %v1497_v55 = vld [vmem:[%s1877_s5 + $0x8] sm:$0xff]   ;;  %v1640_v58 = vld [vmem:[%s1874_s2] ss:$0 sm:$0xff]  ;;  %s1771_s14 = scalar_lea.vmem %s1879_s7, %s1244_s8 }
   0xe   : > { %1400 = vmatprep.subr.bf16.mxu1 %v1491_v1  ;;  %v283_v2 = vld [vmem:[%s1569_s11] sm:$0xff]  ;;  %v284_v3 = vld [vmem:[%s1569_s11 + $0x8] sm:$0xff]  ;;  %v285_v4 = vld [vmem:[%s1569_s11 + $0x10] sm:$0xff]  ;;  %1440 = vmatprep.subr.bf16.mxu0 %v1495_v53 }
   0xf   : > { %v318_v5 = vpack.c.bf16 %v284_v3, %v283_v2  ;;  %v286_v6 = vld [vmem:[%s1569_s11 + $0x18] sm:$0xff]  ;;  %v287_v7 = vld [vmem:[%s1569_s11 + $0x20] sm:$0xff]  ;;  %v288_v8 = vld [vmem:[%s1569_s11 + $0x28] sm:$0xff] }
  0x10   : > { %v319_v9 = vpack.c.bf16 %v286_v6, %v285_v4  ;;  %v320_v10 = vpack.c.bf16 %v288_v8, %v287_v7  ;;  %v289_v11 = vld [vmem:[%s1569_s11 + $0x30] sm:$0xff]  ;;  %v290_v12 = vld [vmem:[%s1569_s11 + $0x38] sm:$0xff]  ;;  %v291_v13 = vld [vmem:[%s1569_s11 + $0x40] sm:$0xff] }
  0x11   : > { %1368 = vmatprep.mubr.msk.bf16.mxu0 %vm346_vm0, %v318_v5  ;;  %v292_v14 = vld [vmem:[%s1569_s11 + $0x48] sm:$0xff]  ;;  %v299_v15 = vld [vmem:[%s1569_s11 + $0x80] sm:$0xff]  ;;  %v301_v18 = vld [vmem:[%s1569_s11 + $0x90] sm:$0xff]  ;;  %v321_v24 = vpack.c.bf16 %v290_v12, %v289_v11 }
  0x12   : > { %1369 = vmatmul.mubr.msk.bf16.vlgmr.msra.gmra.mxu0 %vm346_vm0, %v319_v9  ;;  %v300_v16 = vld [vmem:[%s1569_s11 + $0x88] sm:$0xff]  ;;  %v302_v19 = vld [vmem:[%s1569_s11 + $0x98] sm:$0xff]  ;;  %v303_v20 = vld [vmem:[%s1569_s11 + $0xa0] sm:$0xff]  ;;  %v322_v26 = vpack.c.bf16 %v292_v14, %v291_v13 }
  0x13   : > { %1372 = vmatprep.mubr.msk.bf16.mxu0 %vm346_vm0, %v320_v10  ;;  %v326_v17 = vpack.c.bf16 %v300_v16, %v299_v15  ;;  %v327_v21 = vpack.c.bf16 %v302_v19, %v301_v18  ;;  %v304_v22 = vld [vmem:[%s1569_s11 + $0xa8] sm:$0xff]  ;;  %v305_v27 = vld [vmem:[%s1569_s11 + $0xb0] sm:$0xff]  ;;  %v306_v29 = vld [vmem:[%s1569_s11 + $0xb8] sm:$0xff]  ;;  %1441 = vmatpush3.bf16.msra.mxu0 %v1495_v53 }
  0x14   : > { %v328_v25 = vpack.c.bf16 %v304_v22, %v303_v20  ;;  %v307_v30 = vld [vmem:[%s1569_s11 + $0xc0] sm:$0xff]  ;;  %v308_v31 = vld [vmem:[%s1569_s11 + $0xc8] sm:$0xff]  ;;  %v293_v32 = vld [vmem:[%s1569_s11 + $0x50] sm:$0xff]  ;;  %v329_v34 = vpack.c.bf16 %v306_v29, %v305_v27  ;;  %1442 = vmatprep.subr.bf16.mxu0 %v1496_v54 }
  0x15   : > { %1384 = vmatprep.mubr.msk.bf16.mxu1 %vm346_vm0, %v326_v17  ;;  %v294_v33 = vld [vmem:[%s1569_s11 + $0x58] sm:$0xff]  ;;  %v295_v35 = vld [vmem:[%s1569_s11 + $0x60] sm:$0xff]  ;;  %v296_v36 = vld [vmem:[%s1569_s11 + $0x68] sm:$0xff]  ;;  %v330_v37 = vpack.c.bf16 %v308_v31, %v307_v30 }
  0x16   : > { %1385 = vmatmul.mubr.msk.bf16.vlgmr.msra.gmra.mxu1 %vm346_vm0, %v327_v21  ;;  %v323_v38 = vpack.c.bf16 %v294_v33, %v293_v32  ;;  %v324_v39 = vpack.c.bf16 %v296_v36, %v295_v35  ;;  %v309_v40 = vld [vmem:[%s1569_s11 + $0xd0] sm:$0xff]  ;;  %v310_v41 = vld [vmem:[%s1569_s11 + $0xd8] sm:$0xff]  ;;  %v311_v42 = vld [vmem:[%s1569_s11 + $0xe0] sm:$0xff] }
  0x17   : > { %1388 = vmatprep.mubr.msk.bf16.mxu1 %vm346_vm0, %v328_v25  ;;  %1401 = vmatpush3.bf16.msra.mxu1 %v1491_v1  ;;  %v312_v43 = vld [vmem:[%s1569_s11 + $0xe8] sm:$0xff]  ;;  %v297_v44 = vld [vmem:[%s1569_s11 + $0x70] sm:$0xff]  ;;  %v298_v45 = vld [vmem:[%s1569_s11 + $0x78] sm:$0xff]  ;;  %v331_v46 = vpack.c.bf16 %v310_v41, %v309_v40 }
  0x18   : > { %1402 = vmatprep.subr.bf16.mxu1 %v1492_v23  ;;  %v332_v47 = vpack.c.bf16 %v312_v43, %v311_v42  ;;  %v325_v48 = vpack.c.bf16 %v298_v45, %v297_v44  ;;  %v313_v49 = vld [vmem:[%s1569_s11 + $0xf0] sm:$0xff]  ;;  %v314_v50 = vld [vmem:[%s1569_s11 + $0xf8] sm:$0xff]  ;;  %1443 = vmatpush3.bf16.msra.mxu0 %v1496_v54 }
  0x19   : > { %v333_v51 = vpack.c.bf16 %v314_v50, %v313_v49  ;;  %1444 = vmatprep.subr.bf16.mxu0 %v1497_v55 }
  0x1a   : > { %1373 = vmatmul.mubr.msk.bf16.gmra.mxu0 %vm346_vm0, %v321_v24 }
  0x1b   : > { %1376 = vmatprep.mubr.msk.bf16.mxu0 %vm346_vm0, %v322_v26  ;;  %1403 = vmatpush3.bf16.msra.mxu1 %v1492_v23 }
  0x1c   : > { %1404 = vmatprep.subr.bf16.mxu1 %v1493_v28  ;;  %1445 = vmatpush3.bf16.msra.mxu0 %v1497_v55 }
  0x1e   : > { %1389 = vmatmul.mubr.msk.bf16.gmra.mxu1 %vm346_vm0, %v329_v34 }
  0x1f   : > { %1392 = vmatprep.mubr.msk.bf16.mxu1 %vm346_vm0, %v330_v37  ;;  %1405 = vmatpush3.bf16.msra.mxu1 %v1493_v28 }
  0x20   : > { %1406 = vmatprep.subr.bf16.mxu1 %v1494_v52 }
  0x22   : > { %1377 = vmatmul.mubr.msk.bf16.gmra.mxu0 %vm346_vm0, %v323_v38 }
  0x23   : > { %1380 = vmatprep.mubr.msk.bf16.mxu0 %vm346_vm0, %v324_v39  ;;  %1407 = vmatpush3.bf16.msra.mxu1 %v1494_v52 }
  0x26   : > { %1393 = vmatmul.mubr.msk.bf16.gmra.mxu1 %vm346_vm0, %v331_v46 }
  0x27   : > { %1396 = vmatprep.mubr.msk.bf16.mxu1 %vm346_vm0, %v332_v47 }
  0x2a   : > { %1381 = vmatmul.mubr.msk.bf16.gmra.mxu0 %vm346_vm0, %v325_v48 }
  0x2e   : > { %1397 = vmatmul.mubr.msk.bf16.gmra.mxu1 %vm346_vm0, %v333_v51 }
  0xd2   : > { %v1370_v56 = vpop.f32.mrf.mxu0 }
  0xd3   : > { %v438_v63 = vadd.f32 %v1370_v56, %v1640_v58 }
  0xd4   : > { %v429_v57 = vpop.f32.mrf.mxu0 }
  0xd5   : > { %v430_v60 = vadd.f32 %v1640_v58, %v429_v57  ;;  %v558_v8 = vmax.f32 %v438_v63, 0.0 }
  0xd6   : > { %v1371_v59 = vpop.f32.mrf.mxu0  ;;  %v1644_v62 = vpop.f32.mrf.mxu1 }
  0xd7   : > { %v441_v61 = vadd.f32 %v1371_v59, %v1640_v58  ;;  %v556_v5 = vmax.f32 %v430_v60, 0.0 }
  0xd8   : > { %v432_v0 = vpop.f32.mrf.mxu0  ;;  %v493_v2 = vpop.f32.mrf.mxu1 }
  0xd9   : > { %v433_v1 = vadd.f32 %v1640_v58, %v432_v0  ;;  %v559_v3 = vmax.f32 %v441_v61, 0.0  ;;  %v494_v46 = vadd.f32 %v1640_v58, %v493_v2 }
  0xda   : > { %v1374_v4 = vpop.f32.mrf.mxu0  ;;  %v1648_v7 = vpop.f32.mrf.mxu1 }
  0xdb   : > { %v557_v6 = vmax.f32 %v433_v1, 0.0  ;;  %v598_v12 = vpack.c.bf16 %v559_v3, %v558_v8  ;;  %v454_v17 = vadd.f32 %v1374_v4, %v1640_v58  ;;  %v572_v55 = vmax.f32 %v494_v46, 0.0 }
  0xdc   : > { %v445_v9 = vpop.f32.mrf.mxu0  ;;  %v496_v11 = vpop.f32.mrf.mxu1  ;;  %v505_v8 = vadd.f32 %v1648_v7, %v1640_v58 }
  0xdd   : > { %v597_v10 = vpack.c.bf16 %v557_v6, %v556_v5  ;;  %v446_v14 = vadd.f32 %v1640_v58, %v445_v9  ;;  %v562_v26 = vmax.f32 %v454_v17, 0.0  ;;  %v497_v47 = vadd.f32 %v1640_v58, %v496_v11 }
  0xde   : > { %v1375_v13 = vpop.f32.mrf.mxu0  ;;  %v1653_v16 = vpop.f32.mrf.mxu1  ;;  %v502_v5 = vadd.f32 %v1644_v62, %v1640_v58 }
  0xdf   : > { %v457_v15 = vadd.f32 %v1375_v13, %v1640_v58  ;;  %1408 = vmatprep.mubr.msk.bf16.mxu1 %vm643_vm1, %v597_v10  ;;  %v560_v23 = vmax.f32 %v446_v14, 0.0  ;;  %v573_v57 = vmax.f32 %v497_v47, 0.0  ;;  %v575_v13 = vmax.f32 %v505_v8, 0.0 }
  0xe0   : > { %v448_v18 = vpop.f32.mrf.mxu0  ;;  %1409 = vmatmul.mubr.msk.bf16.vlgmr.msra.gmra.mxu1 %vm643_vm1, %v598_v12  ;;  %v509_v20 = vpop.f32.mrf.mxu1  ;;  %v574_v12 = vmax.f32 %v502_v5, 0.0  ;;  %v518_v7 = vadd.f32 %v1653_v16, %v1640_v58 }
  0xe1   : > { %v449_v19 = vadd.f32 %v1640_v58, %v448_v18  ;;  %v563_v21 = vmax.f32 %v457_v15, 0.0  ;;  %v605_v2 = vpack.c.bf16 %v573_v57, %v572_v55  ;;  %v510_v3 = vadd.f32 %v1640_v58, %v509_v20 }
  0xe2   : > { %v1378_v22 = vpop.f32.mrf.mxu0  ;;  %v1658_v25 = vpop.f32.mrf.mxu1  ;;  %v606_v18 = vpack.c.bf16 %v575_v13, %v574_v12 }
  0xe3   : > { %v561_v24 = vmax.f32 %v449_v19, 0.0  ;;  %v600_v30 = vpack.c.bf16 %v563_v21, %v562_v26  ;;  %v470_v35 = vadd.f32 %v1378_v22, %v1640_v58  ;;  %v576_v10 = vmax.f32 %v510_v3, 0.0 }
  0xe4   : > { %v461_v27 = vpop.f32.mrf.mxu0  ;;  %v512_v29 = vpop.f32.mrf.mxu1  ;;  %v521_v19 = vadd.f32 %v1658_v25, %v1640_v58 }
  0xe5   : > { %v599_v28 = vpack.c.bf16 %v561_v24, %v560_v23  ;;  %v462_v32 = vadd.f32 %v1640_v58, %v461_v27  ;;  %v566_v43 = vmax.f32 %v470_v35, 0.0  ;;  %v513_v4 = vadd.f32 %v1640_v58, %v512_v29 }
  0xe6   : > { %v1379_v31 = vpop.f32.mrf.mxu0  ;;  %v1663_v34 = vpop.f32.mrf.mxu1  ;;  %v578_v23 = vmax.f32 %v518_v7, 0.0  ;;  %v579_v24 = vmax.f32 %v521_v19, 0.0 }
  0xe7   : > { %v473_v33 = vadd.f32 %v1379_v31, %v1640_v58  ;;  %1412 = vmatprep.mubr.msk.bf16.mxu1 %vm643_vm1, %v599_v28  ;;  %v564_v41 = vmax.f32 %v462_v32, 0.0  ;;  %v577_v11 = vmax.f32 %v513_v4, 0.0  ;;  %v534_v16 = vadd.f32 %v1663_v34, %v1640_v58 }
  0xe8   : > { %v464_v36 = vpop.f32.mrf.mxu0  ;;  %1413 = vmatmul.mubr.msk.bf16.gmra.mxu1 %vm643_vm1, %v600_v30  ;;  %v525_v40 = vpop.f32.mrf.mxu1  ;;  %v608_v30 = vpack.c.bf16 %v579_v24, %v578_v23 }
  0xe9   : > { %v465_v37 = vadd.f32 %v1640_v58, %v464_v36  ;;  %v567_v38 = vmax.f32 %v473_v33, 0.0  ;;  %v607_v15 = vpack.c.bf16 %v577_v11, %v576_v10  ;;  %v526_v17 = vadd.f32 %v1640_v58, %v525_v40 }
  0xea   : > { %v1382_v39 = vpop.f32.mrf.mxu0  ;;  %v1395_v50 = vpop.f32.mrf.mxu1  ;;  %v582_v33 = vmax.f32 %v534_v16, 0.0 }
  0xeb   : > { %v565_v42 = vmax.f32 %v465_v37, 0.0  ;;  %v602_v48 = vpack.c.bf16 %v567_v38, %v566_v43  ;;  %v486_v53 = vadd.f32 %v1382_v39, %v1640_v58  ;;  %v580_v21 = vmax.f32 %v526_v17, 0.0 }
  0xec   : > { %v477_v44 = vpop.f32.mrf.mxu0  ;;  %v528_v60 = vpop.f32.mrf.mxu1  ;;  %v537_v25 = vadd.f32 %v1395_v50, %v1640_v58 }
  0xed   : > { %v601_v45 = vpack.c.bf16 %v565_v42, %v564_v41  ;;  %v478_v51 = vadd.f32 %v1640_v58, %v477_v44  ;;  %v570_v0 = vmax.f32 %v486_v53, 0.0  ;;  %v529_v62 = vadd.f32 %v1640_v58, %v528_v60  ;;  %v1498_v42 = vld [vmem:[%s1877_s5] sm:$0xff]  }
  0xee   : > { %v1383_v49 = vpop.f32.mrf.mxu0  ;;  %v1398_v9 = vpop.f32.mrf.mxu1  ;;  %v583_v35 = vmax.f32 %v537_v25, 0.0  ;;  %1446 = vmatprep.subr.bf16.mxu0 %v1498_v42 }
  0xef   : > { %v489_v52 = vadd.f32 %v1383_v49, %v1640_v58  ;;  %1416 = vmatprep.mubr.msk.bf16.mxu1 %vm643_vm1, %v601_v45  ;;  %v568_v61 = vmax.f32 %v478_v51, 0.0  ;;  %v581_v22 = vmax.f32 %v529_v62, 0.0  ;;  %v550_v38 = vadd.f32 %v1398_v9, %v1640_v58  ;;  %1447 = vmatpush3.bf16.msra.mxu0 %v1498_v42 }
  0xf0   : > { %v480_v54 = vpop.f32.mrf.mxu0  ;;  %1417 = vmatmul.mubr.msk.bf16.gmra.mxu1 %vm643_vm1, %v602_v48  ;;  %v541_v14 = vpop.f32.mrf.mxu1  ;;  %v610_v37 = vpack.c.bf16 %v583_v35, %v582_v33 }
  0xf1   : > { %v481_v56 = vadd.f32 %v1640_v58, %v480_v54  ;;  %v571_v59 = vmax.f32 %v489_v52, 0.0  ;;  %v609_v27 = vpack.c.bf16 %v581_v22, %v580_v21  ;;  %v542_v28 = vadd.f32 %v1640_v58, %v541_v14 }
  0xf2   : > { %v1399_v20 = vpop.f32.mrf.mxu1  ;;  %v586_v34 = vmax.f32 %v550_v38, 0.0 }
  0xf3   : > { %v569_v63 = vmax.f32 %v481_v56, 0.0  ;;  %v604_v6 = vpack.c.bf16 %v571_v59, %v570_v0  ;;  %v584_v31 = vmax.f32 %v542_v28, 0.0  ;;  %v553_v39 = vadd.f32 %v1399_v20, %v1640_v58 }
  0xf4   : > { %v544_v26 = vpop.f32.mrf.mxu1 }
  0xf5   : > { %v603_v1 = vpack.c.bf16 %v569_v63, %v568_v61  ;;  %v545_v29 = vadd.f32 %v1640_v58, %v544_v26  ;;  %v587_v40 = vmax.f32 %v553_v39, 0.0  ;;  %v1711_v58 = vld [vmem:[%s1876_s4] ss:$0 sm:$0xff] }
  0xf7   : > { %1420 = vmatprep.mubr.msk.bf16.mxu1 %vm643_vm1, %v603_v1  ;;  %v585_v32 = vmax.f32 %v545_v29, 0.0  ;;  %v612_v41 = vpack.c.bf16 %v587_v40, %v586_v34 }
  0xf8   : > { %1421 = vmatmul.mubr.msk.bf16.gmra.mxu1 %vm643_vm1, %v604_v6 }
  0xf9   : > { %1424 = vmatprep.mubr.msk.bf16.mxu1 %vm643_vm1, %v605_v2  ;;  %v611_v36 = vpack.c.bf16 %v585_v32, %v584_v31 }
 0x100   : > { %1425 = vmatmul.mubr.msk.bf16.gmra.mxu1 %vm643_vm1, %v606_v18 }
 0x101   : > { %1428 = vmatprep.mubr.msk.bf16.mxu1 %vm643_vm1, %v607_v15 }
 0x108   : > { %1429 = vmatmul.mubr.msk.bf16.gmra.mxu1 %vm643_vm1, %v608_v30 }
 0x109   : > { %1432 = vmatprep.mubr.msk.bf16.mxu1 %vm643_vm1, %v609_v27 }
 0x110   : > { %1433 = vmatmul.mubr.msk.bf16.gmra.mxu1 %vm643_vm1, %v610_v37 }
 0x111   : > { %1436 = vmatprep.mubr.msk.bf16.mxu1 %vm643_vm1, %v611_v36 }
 0x118   : > { %1437 = vmatmul.mubr.msk.bf16.gmra.mxu1 %vm643_vm1, %v612_v41 }
 0x1a0   : > { %v1410_v43 = vpop.f32.mrf.mxu1 }
 0x1a1   : > { %v735_v48 = vadd.f32 %v1410_v43, %v1711_v58 }
 0x1a2   : > { %v726_v44 = vpop.f32.mrf.mxu1 }
 0x1a3   : > { %v727_v46 = vadd.f32 %v1711_v58, %v726_v44  ;;  %v855_v55 = vmax.f32 %v735_v48, 0.0 }
 0x1a4   : > { %v1411_v45 = vpop.f32.mrf.mxu1 }
 0x1a5   : > { %v738_v47 = vadd.f32 %v1411_v45, %v1711_v58  ;;  %v853_v53 = vmax.f32 %v727_v46, 0.0 }
 0x1a6   : > { %v729_v49 = vpop.f32.mrf.mxu1 }
 0x1a7   : > { %v730_v50 = vadd.f32 %v1711_v58, %v729_v49  ;;  %v856_v51 = vmax.f32 %v738_v47, 0.0 }
 0x1a8   : > { %v1414_v52 = vpop.f32.mrf.mxu1 }
 0x1a9   : > { %v854_v54 = vmax.f32 %v730_v50, 0.0  ;;  %v895_v59 = vpack.c.bf16 %v856_v51, %v855_v55  ;;  %v751_v0 = vadd.f32 %v1414_v52, %v1711_v58 }
 0x1aa   : > { %v742_v56 = vpop.f32.mrf.mxu1 }
 0x1ab   : > { %v894_v57 = vpack.c.bf16 %v854_v54, %v853_v53  ;;  %v743_v61 = vadd.f32 %v1711_v58, %v742_v56  ;;  %v859_v8 = vmax.f32 %v751_v0, 0.0 }
 0x1ac   : > { %v1415_v60 = vpop.f32.mrf.mxu1 }
 0x1ad   : > { %v754_v63 = vadd.f32 %v1415_v60, %v1711_v58  ;;  %1448 = vmatprep.mubr.msk.bf16.mxu0 %vm643_vm1, %v894_v57  ;;  %v857_v5 = vmax.f32 %v743_v61, 0.0 }
 0x1ae   : > { %v745_v1 = vpop.f32.mrf.mxu1  ;;  %1449 = vmatmul.mubr.msk.bf16.vlgmr.msra.gmra.mxu0 %vm643_vm1, %v895_v59 }
 0x1af   : > { %v746_v2 = vadd.f32 %v1711_v58, %v745_v1  ;;  %v860_v3 = vmax.f32 %v754_v63, 0.0 }
 0x1b0   : > { %v1418_v4 = vpop.f32.mrf.mxu1 }
 0x1b1   : > { %v858_v6 = vmax.f32 %v746_v2, 0.0  ;;  %v897_v11 = vpack.c.bf16 %v860_v3, %v859_v8  ;;  %v767_v15 = vadd.f32 %v1418_v4, %v1711_v58 }
 0x1b2   : > { %v758_v9 = vpop.f32.mrf.mxu1 }
 0x1b3   : > { %v896_v10 = vpack.c.bf16 %v858_v6, %v857_v5  ;;  %v759_v13 = vadd.f32 %v1711_v58, %v758_v9  ;;  %v863_v21 = vmax.f32 %v767_v15, 0.0 }
 0x1b4   : > { %v1419_v12 = vpop.f32.mrf.mxu1 }
 0x1b5   : > { %v770_v14 = vadd.f32 %v1419_v12, %v1711_v58  ;;  %1452 = vmatprep.mubr.msk.bf16.mxu0 %vm643_vm1, %v896_v10  ;;  %v861_v19 = vmax.f32 %v759_v13, 0.0 }
 0x1b6   : > { %v761_v17 = vpop.f32.mrf.mxu1  ;;  %1453 = vmatmul.mubr.msk.bf16.gmra.mxu0 %vm643_vm1, %v897_v11 }
 0x1b7   : > { %v762_v62 = vadd.f32 %v1711_v58, %v761_v17  ;;  %v864_v18 = vmax.f32 %v770_v14, 0.0 }
 0x1b8   : > { %v1422_v7 = vpop.f32.mrf.mxu1 }
 0x1b9   : > { %v862_v20 = vmax.f32 %v762_v62, 0.0  ;;  %v899_v24 = vpack.c.bf16 %v864_v18, %v863_v21  ;;  %v783_v29 = vadd.f32 %v1422_v7, %v1711_v58 }
 0x1ba   : > { %v774_v22 = vpop.f32.mrf.mxu1 }
 0x1bb   : > { %v898_v23 = vpack.c.bf16 %v862_v20, %v861_v19  ;;  %v775_v27 = vadd.f32 %v1711_v58, %v774_v22  ;;  %v867_v35 = vmax.f32 %v783_v29, 0.0 }
 0x1bc   : > { %v1423_v26 = vpop.f32.mrf.mxu1 }
 0x1bd   : > { %v786_v28 = vadd.f32 %v1423_v26, %v1711_v58  ;;  %1456 = vmatprep.mubr.msk.bf16.mxu0 %vm643_vm1, %v898_v23  ;;  %v865_v32 = vmax.f32 %v775_v27, 0.0 }
 0x1be   : > { %v777_v30 = vpop.f32.mrf.mxu1  ;;  %1457 = vmatmul.mubr.msk.bf16.gmra.mxu0 %vm643_vm1, %v899_v24 }
 0x1bf   : > { %v778_v16 = vadd.f32 %v1711_v58, %v777_v30  ;;  %v868_v25 = vmax.f32 %v786_v28, 0.0 }
 0x1c0   : > { %v1426_v31 = vpop.f32.mrf.mxu1 }
 0x1c1   : > { %v866_v33 = vmax.f32 %v778_v16, 0.0  ;;  %v901_v38 = vpack.c.bf16 %v868_v25, %v867_v35  ;;  %v799_v41 = vadd.f32 %v1426_v31, %v1711_v58  ;;  %v1764_v16 = vld [vmem:[%s1878_s6] ss:$0 sm:$0xff] }
 0x1c2   : > { %v790_v36 = vpop.f32.mrf.mxu1 }
 0x1c3   : > { %v900_v37 = vpack.c.bf16 %v866_v33, %v865_v32  ;;  %v791_v34 = vadd.f32 %v1711_v58, %v790_v36  ;;  %v871_v48 = vmax.f32 %v799_v41, 0.0 }
 0x1c4   : > { %v1427_v39 = vpop.f32.mrf.mxu1 }
 0x1c5   : > { %v802_v40 = vadd.f32 %v1427_v39, %v1711_v58  ;;  %1460 = vmatprep.mubr.msk.bf16.mxu0 %vm643_vm1, %v900_v37  ;;  %v869_v46 = vmax.f32 %v791_v34, 0.0 }
 0x1c6   : > { %v793_v42 = vpop.f32.mrf.mxu1  ;;  %1461 = vmatmul.mubr.msk.bf16.gmra.mxu0 %vm643_vm1, %v901_v38 }
 0x1c7   : > { %v794_v43 = vadd.f32 %v1711_v58, %v793_v42  ;;  %v872_v44 = vmax.f32 %v802_v40, 0.0 }
 0x1c8   : > { %v1430_v45 = vpop.f32.mrf.mxu1 }
 0x1c9   : > { %v870_v47 = vmax.f32 %v794_v43, 0.0  ;;  %v903_v51 = vpack.c.bf16 %v872_v44, %v871_v48  ;;  %v815_v55 = vadd.f32 %v1430_v45, %v1711_v58 }
 0x1ca   : > { %v806_v49 = vpop.f32.mrf.mxu1 }
 0x1cb   : > { %v902_v50 = vpack.c.bf16 %v870_v47, %v869_v46  ;;  %v807_v53 = vadd.f32 %v1711_v58, %v806_v49  ;;  %v875_v0 = vmax.f32 %v815_v55, 0.0 }
 0x1cc   : > { %v1431_v52 = vpop.f32.mrf.mxu1 }
 0x1cd   : > { %v818_v54 = vadd.f32 %v1431_v52, %v1711_v58  ;;  %1464 = vmatprep.mubr.msk.bf16.mxu0 %vm643_vm1, %v902_v50  ;;  %v873_v61 = vmax.f32 %v807_v53, 0.0 }
 0x1ce   : > { %v809_v56 = vpop.f32.mrf.mxu1  ;;  %1465 = vmatmul.mubr.msk.bf16.gmra.mxu0 %vm643_vm1, %v903_v51 }
 0x1cf   : > { %v810_v57 = vadd.f32 %v1711_v58, %v809_v56  ;;  %v876_v59 = vmax.f32 %v818_v54, 0.0 }
 0x1d0   : > { %v1434_v60 = vpop.f32.mrf.mxu1 }
 0x1d1   : > { %v874_v63 = vmax.f32 %v810_v57, 0.0  ;;  %v905_v3 = vpack.c.bf16 %v876_v59, %v875_v0  ;;  %v831_v8 = vadd.f32 %v1434_v60, %v1711_v58 }
 0x1d2   : > { %v822_v1 = vpop.f32.mrf.mxu1 }
 0x1d3   : > { %v904_v2 = vpack.c.bf16 %v874_v63, %v873_v61  ;;  %v823_v5 = vadd.f32 %v1711_v58, %v822_v1  ;;  %v879_v15 = vmax.f32 %v831_v8, 0.0 }
 0x1d4   : > { %v1435_v4 = vpop.f32.mrf.mxu1 }
 0x1d5   : > { %v834_v6 = vadd.f32 %v1435_v4, %v1711_v58  ;;  %1468 = vmatprep.mubr.msk.bf16.mxu0 %vm643_vm1, %v904_v2  ;;  %v877_v13 = vmax.f32 %v823_v5, 0.0 }
 0x1d6   : > { %v825_v9 = vpop.f32.mrf.mxu1  ;;  %1469 = vmatmul.mubr.msk.bf16.gmra.mxu0 %vm643_vm1, %v905_v3 }
 0x1d7   : > { %v826_v10 = vadd.f32 %v1711_v58, %v825_v9  ;;  %v880_v11 = vmax.f32 %v834_v6, 0.0 }
 0x1d8   : > { %v1438_v12 = vpop.f32.mrf.mxu1 }
 0x1d9   : > { %v878_v14 = vmax.f32 %v826_v10, 0.0  ;;  %v907_v18 = vpack.c.bf16 %v880_v11, %v879_v15  ;;  %v847_v21 = vadd.f32 %v1438_v12, %v1711_v58 }
 0x1da   : > { %v838_v17 = vpop.f32.mrf.mxu1 }
 0x1db   : > { %v906_v62 = vpack.c.bf16 %v878_v14, %v877_v13  ;;  %v839_v19 = vadd.f32 %v1711_v58, %v838_v17  ;;  %v883_v28 = vmax.f32 %v847_v21, 0.0 }
 0x1dc   : > { %v1439_v7 = vpop.f32.mrf.mxu1 }
 0x1dd   : > { %v850_v20 = vadd.f32 %v1439_v7, %v1711_v58  ;;  %1472 = vmatprep.mubr.msk.bf16.mxu0 %vm643_vm1, %v906_v62  ;;  %v881_v26 = vmax.f32 %v839_v19, 0.0 }
 0x1de   : > { %v841_v22 = vpop.f32.mrf.mxu1  ;;  %1473 = vmatmul.mubr.msk.bf16.gmra.mxu0 %vm643_vm1, %v907_v18 }
 0x1df   : > { %v842_v23 = vadd.f32 %v1711_v58, %v841_v22  ;;  %v884_v24 = vmax.f32 %v850_v20, 0.0 }
 0x1e1   : > { %v882_v27 = vmax.f32 %v842_v23, 0.0  ;;  %v909_v30 = vpack.c.bf16 %v884_v24, %v883_v28 }
 0x1e3   : > { %v908_v29 = vpack.c.bf16 %v882_v27, %v881_v26 }
 0x1e5   : > { %1476 = vmatprep.mubr.msk.bf16.mxu0 %vm643_vm1, %v908_v29 }
 0x1e6   : > { %1477 = vmatmul.mubr.msk.bf16.gmra.mxu0 %vm643_vm1, %v909_v30 }
 0x26e   : > { %v1450_v58 = vpop.f32.mrf.mxu0 }
 0x26f   : > { %v1031_v25 = vadd.f32 %v1450_v58, %v1764_v16 }
 0x270   : > { %v1022_v31 = vpop.f32.mrf.mxu0 }
 0x271   : > { %1152 = vst.msk [vmem:[%s1771_s14 + $0x10] sm:$0xff] %vm1149_vm2, %v1031_v25  ;;  %v1023_v32 = vadd.f32 %v1764_v16, %v1022_v31 }
 0x272   : > { %v1451_v33 = vpop.f32.mrf.mxu0 }
 0x273   : > { %1150 = vst.msk [vmem:[%s1771_s14] sm:$0xff] %vm1149_vm2, %v1023_v32  ;;  %v1034_v35 = vadd.f32 %v1451_v33, %v1764_v16 }
 0x274   : > { %v1025_v36 = vpop.f32.mrf.mxu0 }
 0x275   : > { %1153 = vst.msk [vmem:[%s1771_s14 + $0x18] sm:$0xff] %vm1149_vm2, %v1034_v35  ;;  %v1026_v37 = vadd.f32 %v1764_v16, %v1025_v36 }
 0x276   : > { %v1454_v38 = vpop.f32.mrf.mxu0 }
 0x277   : > { %1151 = vst.msk [vmem:[%s1771_s14 + $0x8] sm:$0xff] %vm1149_vm2, %v1026_v37  ;;  %v1047_v39 = vadd.f32 %v1454_v38, %v1764_v16 }
 0x278   : > { %v1038_v34 = vpop.f32.mrf.mxu0 }
 0x279   : > { %1156 = vst.msk [vmem:[%s1771_s14 + $0x30] sm:$0xff] %vm1149_vm2, %v1047_v39  ;;  %v1039_v40 = vadd.f32 %v1764_v16, %v1038_v34 }
 0x27a   : > { %v1455_v41 = vpop.f32.mrf.mxu0 }
 0x27b   : > { %1154 = vst.msk [vmem:[%s1771_s14 + $0x20] sm:$0xff] %vm1149_vm2, %v1039_v40  ;;  %v1050_v42 = vadd.f32 %v1455_v41, %v1764_v16 }
 0x27c   : > { %v1041_v43 = vpop.f32.mrf.mxu0 }
 0x27d   : > { %1157 = vst.msk [vmem:[%s1771_s14 + $0x38] sm:$0xff] %vm1149_vm2, %v1050_v42  ;;  %v1042_v44 = vadd.f32 %v1764_v16, %v1041_v43 }
 0x27e   : > { %v1458_v45 = vpop.f32.mrf.mxu0 }
 0x27f   : > { %1155 = vst.msk [vmem:[%s1771_s14 + $0x28] sm:$0xff] %vm1149_vm2, %v1042_v44  ;;  %v1063_v46 = vadd.f32 %v1458_v45, %v1764_v16 }
 0x280   : > { %v1054_v47 = vpop.f32.mrf.mxu0 }
 0x281   : > { %1160 = vst.msk [vmem:[%s1771_s14 + $0x50] sm:$0xff] %vm1149_vm2, %v1063_v46  ;;  %v1055_v48 = vadd.f32 %v1764_v16, %v1054_v47 }
 0x282   : > { %v1459_v49 = vpop.f32.mrf.mxu0 }
 0x283   : > { %1158 = vst.msk [vmem:[%s1771_s14 + $0x40] sm:$0xff] %vm1149_vm2, %v1055_v48  ;;  %v1066_v50 = vadd.f32 %v1459_v49, %v1764_v16 }
 0x284   : > { %v1057_v51 = vpop.f32.mrf.mxu0 }
 0x285   : > { %1161 = vst.msk [vmem:[%s1771_s14 + $0x58] sm:$0xff] %vm1149_vm2, %v1066_v50  ;;  %v1058_v52 = vadd.f32 %v1764_v16, %v1057_v51 }
 0x286   : > { %v1462_v53 = vpop.f32.mrf.mxu0 }
 0x287   : > { %1159 = vst.msk [vmem:[%s1771_s14 + $0x48] sm:$0xff] %vm1149_vm2, %v1058_v52  ;;  %v1079_v54 = vadd.f32 %v1462_v53, %v1764_v16 }
 0x288   : > { %v1070_v55 = vpop.f32.mrf.mxu0 }
 0x289   : > { %1164 = vst.msk [vmem:[%s1771_s14 + $0x70] sm:$0xff] %vm1149_vm2, %v1079_v54  ;;  %v1071_v56 = vadd.f32 %v1764_v16, %v1070_v55 }
 0x28a   : > { %v1463_v57 = vpop.f32.mrf.mxu0 }
 0x28b   : > { %1162 = vst.msk [vmem:[%s1771_s14 + $0x60] sm:$0xff] %vm1149_vm2, %v1071_v56  ;;  %v1082_v59 = vadd.f32 %v1463_v57, %v1764_v16 }
 0x28c   : > { %v1073_v60 = vpop.f32.mrf.mxu0 }
 0x28d   : > { %1165 = vst.msk [vmem:[%s1771_s14 + $0x78] sm:$0xff] %vm1149_vm2, %v1082_v59  ;;  %v1074_v61 = vadd.f32 %v1764_v16, %v1073_v60 }
 0x28e   : > { %v1466_v63 = vpop.f32.mrf.mxu0 }
 0x28f   : > { %1163 = vst.msk [vmem:[%s1771_s14 + $0x68] sm:$0xff] %vm1149_vm2, %v1074_v61  ;;  %v1095_v0 = vadd.f32 %v1466_v63, %v1764_v16 }
 0x290   : > { %v1086_v1 = vpop.f32.mrf.mxu0 }
 0x291   : > { %1168 = vst.msk [vmem:[%s1771_s14 + $0x90] sm:$0xff] %vm1149_vm2, %v1095_v0  ;;  %v1087_v2 = vadd.f32 %v1764_v16, %v1086_v1 }
 0x292   : > { %v1467_v3 = vpop.f32.mrf.mxu0 }
 0x293   : > { %1166 = vst.msk [vmem:[%s1771_s14 + $0x80] sm:$0xff] %vm1149_vm2, %v1087_v2  ;;  %v1098_v4 = vadd.f32 %v1467_v3, %v1764_v16 }
 0x294   : > { %v1089_v5 = vpop.f32.mrf.mxu0 }
 0x295   : > { %1169 = vst.msk [vmem:[%s1771_s14 + $0x98] sm:$0xff] %vm1149_vm2, %v1098_v4  ;;  %v1090_v6 = vadd.f32 %v1764_v16, %v1089_v5 }
 0x296   : > { %v1470_v8 = vpop.f32.mrf.mxu0 }
 0x297   : > { %1167 = vst.msk [vmem:[%s1771_s14 + $0x88] sm:$0xff] %vm1149_vm2, %v1090_v6  ;;  %v1111_v9 = vadd.f32 %v1470_v8, %v1764_v16 }
 0x298   : > { %v1102_v10 = vpop.f32.mrf.mxu0 }
 0x299   : > { %1172 = vst.msk [vmem:[%s1771_s14 + $0xb0] sm:$0xff] %vm1149_vm2, %v1111_v9  ;;  %v1103_v11 = vadd.f32 %v1764_v16, %v1102_v10 }
 0x29a   : > { %v1471_v12 = vpop.f32.mrf.mxu0 }
 0x29b   : > { %1170 = vst.msk [vmem:[%s1771_s14 + $0xa0] sm:$0xff] %vm1149_vm2, %v1103_v11  ;;  %v1114_v13 = vadd.f32 %v1471_v12, %v1764_v16 }
 0x29c   : > { %v1105_v14 = vpop.f32.mrf.mxu0 }
 0x29d   : > { %1173 = vst.msk [vmem:[%s1771_s14 + $0xb8] sm:$0xff] %vm1149_vm2, %v1114_v13  ;;  %v1106_v15 = vadd.f32 %v1764_v16, %v1105_v14 }
 0x29e   : > { %v1474_v17 = vpop.f32.mrf.mxu0 }
 0x29f   : > { %1171 = vst.msk [vmem:[%s1771_s14 + $0xa8] sm:$0xff] %vm1149_vm2, %v1106_v15  ;;  %v1127_v62 = vadd.f32 %v1474_v17, %v1764_v16 }
 0x2a0   : > { %v1118_v18 = vpop.f32.mrf.mxu0 }
 0x2a1   : > { %1176 = vst.msk [vmem:[%s1771_s14 + $0xd0] sm:$0xff] %vm1149_vm2, %v1127_v62  ;;  %v1119_v7 = vadd.f32 %v1764_v16, %v1118_v18 }
 0x2a2   : > { %v1475_v19 = vpop.f32.mrf.mxu0 }
 0x2a3   : > { %1174 = vst.msk [vmem:[%s1771_s14 + $0xc0] sm:$0xff] %vm1149_vm2, %v1119_v7  ;;  %v1130_v20 = vadd.f32 %v1475_v19, %v1764_v16 }
 0x2a4   : > { %v1121_v21 = vpop.f32.mrf.mxu0 }
 0x2a5   : > { %1177 = vst.msk [vmem:[%s1771_s14 + $0xd8] sm:$0xff] %vm1149_vm2, %v1130_v20  ;;  %v1122_v22 = vadd.f32 %v1764_v16, %v1121_v21 }
 0x2a6   : > { %v1478_v23 = vpop.f32.mrf.mxu0 }
 0x2a7   : > { %1175 = vst.msk [vmem:[%s1771_s14 + $0xc8] sm:$0xff] %vm1149_vm2, %v1122_v22  ;;  %v1143_v24 = vadd.f32 %v1478_v23, %v1764_v16 }
 0x2a8   : > { %v1134_v26 = vpop.f32.mrf.mxu0 }
 0x2a9   : > { %1180 = vst.msk [vmem:[%s1771_s14 + $0xf0] sm:$0xff] %vm1149_vm2, %v1143_v24  ;;  %v1135_v27 = vadd.f32 %v1764_v16, %v1134_v26 }
 0x2aa   : > { %v1479_v28 = vpop.f32.mrf.mxu0 }
 0x2ab   : > { %1178 = vst.msk [vmem:[%s1771_s14 + $0xe0] sm:$0xff] %vm1149_vm2, %v1135_v27  ;;  %v1146_v29 = vadd.f32 %v1479_v28, %v1764_v16 }
 0x2ac   : > { %v1137_v30 = vpop.f32.mrf.mxu0 }
 0x2ad   : > { %1181 = vst.msk [vmem:[%s1771_s14 + $0xf8] sm:$0xff] %vm1149_vm2, %v1146_v29  ;;  %v1138_v58 = vadd.f32 %v1764_v16, %v1137_v30 }
 0x2af   : > { %1179 = vst.msk [vmem:[%s1771_s14 + $0xe8] sm:$0xff] %vm1149_vm2, %v1138_v58 }
 0x2b0 PF: > { %s17_s24 = sadd.s32 1, %s1505_s24  }
 0x2b1   : > { %p14_p4 = scmp.ge.s32.totalorder %s17_s24, 4  }
 0x2b3   :  { %16 = sbr.rel (!%p14_p4) target bundleno = 1 (0x1), region = 78 }

</bundles_post_ra>
